<compile_context>
chip_gen: v6e
topology: v6e:2x2x1
jax: 0.10.0
libtpu: 0.0.40
codegen_flags: <defaults>
</compile_context>

<pallas_src>
import functools

import jax
import jax.numpy as jnp
from jax.experimental import pallas as pl
from jax.experimental.pallas import tpu as pltpu


_SMEM = pl.BlockSpec(memory_space=pltpu.MemorySpace.SMEM)


def _round_up(x, m):
    return ((x + m - 1) // m) * m


def _pad_last(x, n_pad):
    n = x.shape[-1]
    if n_pad == n:
        return x
    pad = [(0, 0)] * (x.ndim - 1) + [(0, n_pad - n)]
    return jnp.pad(x, pad)


# ----------------------------------------------------------------------------
# Kernel A: global sum of sigmoid(slope * (W @ x + b)).  Only the scalar sum
#           is emitted (prob_mask is recomputed per-tile in kernel B, avoiding
#           a full (16, N) HBM round trip).  The sum lives in an SMEM output
#           that stays resident across the (reduction) grid axis.
# ----------------------------------------------------------------------------
def _prob_sum_kernel(w_ref, b_ref, x_ref, sum_ref, *, slope, n_valid, tn):
    i = pl.program_id(0)

    @pl.when(i == 0)
    def _():
        sum_ref[0, 0] = jnp.float32(0.0)

    y = jnp.dot(w_ref[...], x_ref[...],
                preferred_element_type=jnp.float32) + b_ref[...]
    p = jax.nn.sigmoid(slope * y)
    # mask out lane padding so the mean (xbar) is exact
    col = i * tn + jax.lax.broadcasted_iota(jnp.int32, p.shape, 1)
    p = jnp.where(col < n_valid, p, 0.0)
    sum_ref[0, 0] = sum_ref[0, 0] + jnp.sum(p)


# ----------------------------------------------------------------------------
# Kernel B: recompute prob = sigmoid(slope*(W@x+b)), sparsity renormalisation,
#           (soft or hard) thresholding and application of the mask to the
#           real / imaginary k-space channels -- one fused, tiled pass.
# ----------------------------------------------------------------------------
def _mask_apply_kernel(scal_ref, w_ref, b_ref, x_ref, thr_ref, ksr_ref,
                       ksi_ref, mask_ref, mr_ref, mi_ref,
                       *, slope, sample_slope, option):
    r = scal_ref[0]
    beta = scal_ref[1]
    le = scal_ref[2]

    y = jnp.dot(w_ref[...], x_ref[...],
                preferred_element_type=jnp.float32) + b_ref[...]
    p = jax.nn.sigmoid(slope * y)
    p = le * p * r + (1.0 - le) * (1.0 - (1.0 - p) * beta)
    if option:
        m = jax.nn.sigmoid(sample_slope * (p - thr_ref[...]))
    else:
        # strict '>' to match torch `(prob > thresh) + 0`
        m = (p > thr_ref[...]).astype(jnp.float32)
    mask_ref[...] = m
    mr_ref[...] = ksr_ref[...] * m
    mi_ref[...] = ksi_ref[...] * m


# ----------------------------------------------------------------------------
# Kernel C: root-sum-of-squares combine over the D axis and coil-sensitivity
#           maps.  One rsqrt per (coil, pixel) on the EUP + multiplies instead
#           of sqrt followed by 2*D full-size divides.
# ----------------------------------------------------------------------------
def _rss_sens_kernel(re_ref, im_ref, comb_ref, sr_ref, si_ref, *, eps):
    re = re_ref[...]
    im = im_ref[...]
    sumsq = jnp.sum(re * re + im * im, axis=1)            # (Coil, thw)
    comb_ref[...] = jnp.sqrt(sumsq)
    # eps guards against a zero combine image (inf/NaN in the torch reference)
    inv = jax.lax.rsqrt(sumsq + eps)[:, None, :]
    sr_ref[...] = re * inv
    si_ref[...] = im * inv


# ----------------------------------------------------------------------------
# Wrapper (glue + Pallas calls).
# ----------------------------------------------------------------------------
def memc_loupe_forward(kspace_mc, params, thresh, option, *,
                       slope, sample_slope, sparsity,
                       tn=2048, hw_tile=512):
    B, C, D, H, W = kspace_mc.shape          # NCDHW, e.g. (1, 32, D, H, W)
    assert B == 1 and C % 2 == 0
    Ccoil = C // 2
    N = D * H * W
    HW = H * W

    # --- conv input depends only on the parameters (0*kspace is identity) ---
    awr = params["add_weight_real"].reshape(Ccoil, N)
    awi = params["add_weight_imag"].reshape(Ccoil, N)
    x2d = jnp.concatenate([awr, awi], axis=0)               # (32, N)
    w2d = params["conv_w"]                                   # (16, 32)
    b2d = params["conv_b"].reshape(Ccoil, 1)                 # (16, 1)

    # --- lane-axis tiling -----------------------------------------------------
    tn = max(128, _round_up(min(tn, _round_up(N, 128)), 128))
    n_pad = _round_up(N, tn)
    n_tiles = n_pad // tn

    x2d_p = _pad_last(x2d, n_pad)
    thr_p = _pad_last(thresh.reshape(Ccoil, N), n_pad)
    ksr_p = _pad_last(kspace_mc[:, 0::2].reshape(Ccoil, N), n_pad)
    ksi_p = _pad_last(kspace_mc[:, 1::2].reshape(Ccoil, N), n_pad)

    w_spec = pl.BlockSpec((Ccoil, C), lambda i: (0, 0))
    b_spec = pl.BlockSpec((Ccoil, 1), lambda i: (0, 0))
    x_spec = pl.BlockSpec((C, tn), lambda i: (0, i))
    t_spec = pl.BlockSpec((Ccoil, tn), lambda i: (0, i))

    # --- kernel A: global sum of the probability mask (for xbar) --------------
    psum = pl.pallas_call(
        functools.partial(_prob_sum_kernel, slope=slope, n_valid=N, tn=tn),
        out_shape=jax.ShapeDtypeStruct((1, 1), jnp.float32),
        grid=(n_tiles,),
        in_specs=[w_spec, b_spec, x_spec],
        out_specs=_SMEM,
        compiler_params=pltpu.CompilerParams(
            dimension_semantics=("arbitrary",)),
    )(w2d, b2d, x2d_p)

    xbar = psum[0, 0] / jnp.float32(Ccoil * N)
    r = jnp.float32(sparsity) / xbar
    beta = (1.0 - jnp.float32(sparsity)) / (1.0 - xbar)
    le = (r <= 1.0).astype(jnp.float32)
    scalars = jnp.stack([r, beta, le]).astype(jnp.float32)   # (3,) -> SMEM

    # --- kernel B: renorm + threshold + mask application ----------------------
    mask_p, mreal_p, mimag_p = pl.pallas_call(
        functools.partial(_mask_apply_kernel, slope=slope,
                          sample_slope=sample_slope, option=option),
        out_shape=(jax.ShapeDtypeStruct((Ccoil, n_pad), jnp.float32),
                   jax.ShapeDtypeStruct((Ccoil, n_pad), jnp.float32),
                   jax.ShapeDtypeStruct((Ccoil, n_pad), jnp.float32)),
        grid=(n_tiles,),
        in_specs=[_SMEM, w_spec, b_spec, x_spec, t_spec, t_spec, t_spec],
        out_specs=(t_spec, t_spec, t_spec),
        compiler_params=pltpu.CompilerParams(
            dimension_semantics=("parallel",)),
    )(scalars, w2d, b2d, x2d_p, thr_p, ksr_p, ksi_p)

    mask2d = mask_p[:, :N]
    mreal2d = mreal_p[:, :N]
    mimag2d = mimag_p[:, :N]

    # ---- inverse FFT to image space (plain JAX, see TODO above) --------------
    masked_c = (mreal2d.reshape(Ccoil * D, H, W)
                + 1j * mimag2d.reshape(Ccoil * D, H, W))
    image_mc = jnp.fft.ifft2(masked_c).astype(jnp.complex64)
    image_mc = image_mc.reshape(Ccoil, D, H, W)

    # --- kernel C: RSS combine + sensitivity maps -----------------------------
    thw = max(128, _round_up(min(hw_tile, _round_up(HW, 128)), 128))
    hw_pad = _round_up(HW, thw)
    hw_tiles = hw_pad // thw

    img_re = _pad_last(
        jnp.real(image_mc).reshape(Ccoil, D, HW).astype(jnp.float32), hw_pad)
    img_im = _pad_last(
        jnp.imag(image_mc).reshape(Ccoil, D, HW).astype(jnp.float32), hw_pad)

    c3_spec = pl.BlockSpec((Ccoil, D, thw), lambda i: (0, 0, i))
    c2_spec = pl.BlockSpec((Ccoil, thw), lambda i: (0, i))

    comb_p, sr_p, si_p = pl.pallas_call(
        functools.partial(_rss_sens_kernel, eps=1e-30),
        out_shape=(jax.ShapeDtypeStruct((Ccoil, hw_pad), jnp.float32),
                   jax.ShapeDtypeStruct((Ccoil, D, hw_pad), jnp.float32),
                   jax.ShapeDtypeStruct((Ccoil, D, hw_pad), jnp.float32)),
        grid=(hw_tiles,),
        in_specs=[c3_spec, c3_spec],
        out_specs=(c2_spec, c3_spec, c3_spec),
        compiler_params=pltpu.CompilerParams(
            dimension_semantics=("parallel",)),
    )(img_re, img_im)

    combine_image = comb_p[:, :HW].reshape(Ccoil, H, W)
    sensitivity_map = (sr_p[:, :, :HW] + 1j * si_p[:, :, :HW]
                       ).reshape(Ccoil, D, H, W).astype(jnp.complex64)

    input_k = jnp.fft.fft2(combine_image)
    kspace_out = jnp.stack([jnp.real(input_k), jnp.imag(input_k)],
                           axis=0)[None].astype(jnp.float32)   # (1, 2, 16, H, W)

    input_i = jnp.fft.ifft2(kspace_out[0, 0] + 1j * kspace_out[0, 1])
    rec_mid_img = jnp.stack([jnp.real(input_i), jnp.imag(input_i)],
                            axis=0)[None].astype(jnp.float32)  # (1, 2, 16, H, W)

    last_tensor_mask = mask2d.reshape(1, Ccoil, D, H, W)
    if not option:
        # torch returns an integer 0/1 mask in the hard-threshold branch.
        last_tensor_mask = last_tensor_mask.astype(jnp.int32)

    return last_tensor_mask, kspace_out, rec_mid_img, sensitivity_map


# ----------------------------------------------------------------------------
# Deterministic parameter / input construction and a single test run.
# ----------------------------------------------------------------------------
def make_params(key, input_shape, slope):
    k1, k2, k3, k4 = jax.random.split(key, 4)
    u_r = jax.random.uniform(k1, input_shape, jnp.float32, 1e-4, 1.0 - 1e-4)
    u_i = jax.random.uniform(k2, input_shape, jnp.float32, 1e-4, 1.0 - 1e-4)
    add_weight_real = -jnp.log(1.0 / u_r - 1.0) / slope
    add_weight_imag = -jnp.log(1.0 / u_i - 1.0) / slope
    # Conv3d(32, 16, kernel=1): weight (16, 32, 1, 1, 1) -> (16, 32); bias (16,)
    bound = 1.0 / jnp.sqrt(32.0)
    conv_w = jax.random.uniform(k3, (16, 32), jnp.float32, -bound, bound)
    conv_b = jax.random.uniform(k4, (16,), jnp.float32, -bound, bound)
    return {"add_weight_real": add_weight_real,
            "add_weight_imag": add_weight_imag,
            "conv_w": conv_w,
            "conv_b": conv_b}


if __name__ == "__main__":
    B, C, D, H, W = 1, 32, 4, 16, 16          # NCDHW, 16 real + 16 imag channels
    slope = 5.0
    sample_slope = 12.0
    sparsity = 0.25
    input_shape = (1, C // 2, D, H, W)

    key = jax.random.PRNGKey(0)
    k_param, k_input, k_thresh = jax.random.split(key, 3)

    params = make_params(k_param, input_shape, slope)
    kspace_mc = jax.random.normal(k_input, (B, C, D, H, W), jnp.float32)
    thresh = jax.random.uniform(k_thresh, (1, C // 2, D, H, W), jnp.float32)

    # small tiles so the toy problem size still exercises multi-step grids
    fwd = jax.jit(functools.partial(memc_loupe_forward,
                                    slope=slope,
                                    sample_slope=sample_slope,
                                    sparsity=sparsity,
                                    tn=512, hw_tile=128),
                  static_argnames=("option",))

    mask, kspace_out, rec_mid_img, sens = fwd(kspace_mc, params, thresh,
                                              option=True)
    jax.block_until_ready((mask, kspace_out, rec_mid_img, sens))

    # also exercise the hard-threshold branch once
    mask_h, _, _, _ = fwd(kspace_mc, params, thresh, option=False)
    jax.block_until_ready(mask_h)

    assert mask.shape == (1, 16, D, H, W)
    assert kspace_out.shape == (1, 2, 16, H, W)
    assert rec_mid_img.shape == (1, 2, 16, H, W)
    assert sens.shape == (16, D, H, W) and sens.dtype == jnp.complex64
    assert mask_h.dtype == jnp.int32

    print("KERNEL_OK")
</pallas_src>

<mosaic_0001>
module attributes {stable_mosaic.version = 11 : i64} {
  func.func @_prob_sum_kernel(%arg0: i32, %arg1: memref<16x32xf32, #tpu.memory_space<vmem>>, %arg2: memref<16x1xf32, #tpu.memory_space<vmem>>, %arg3: memref<32x512xf32, #tpu.memory_space<vmem>>, %arg4: memref<1x1xf32, #tpu.memory_space<smem>>) attributes {dimension_semantics = [#tpu.dimension_semantics<arbitrary>], iteration_bounds = array<i64: 2>, scalar_prefetch = 0 : i64, scratch_operands = 0 : i64, tpu.core_type = #tpu.core_type<tc>, window_params = [{pipeline_mode = #tpu.pipeline_mode<synchronous>, transform_indices = @transform_0, window_bounds = array<i64: 16, 32>}, {pipeline_mode = #tpu.pipeline_mode<synchronous>, transform_indices = @transform_1, window_bounds = array<i64: 16, 1>}, {transform_indices = @transform_2, window_bounds = array<i64: 32, 512>}, {transform_indices = @transform_3, window_bounds = array<i64: 1, 1>}]} {
    %c0_i32 = arith.constant 0 : i32
    %0 = arith.cmpi eq, %arg0, %c0_i32 : i32
    %1 = arith.extui %0 : i1 to i32
    %c0_i32_0 = arith.constant 0 : i32
    %2 = arith.cmpi ne, %1, %c0_i32_0 : i32
    scf.if %2 {
      %cst_14 = arith.constant 0.000000e+00 : f32
      %c0_15 = arith.constant 0 : index
      %c0_16 = arith.constant 0 : index
      %31 = memref.load %arg4[%c0_15, %c0_16] : memref<1x1xf32, #tpu.memory_space<smem>>
      memref.store %cst_14, %arg4[%c0_15, %c0_16] : memref<1x1xf32, #tpu.memory_space<smem>>
    } else {
    }
    %c0 = arith.constant 0 : index
    %c0_1 = arith.constant 0 : index
    %3 = vector.load %arg1[%c0, %c0_1] : memref<16x32xf32, #tpu.memory_space<vmem>>, vector<16x32xf32>
    %c0_2 = arith.constant 0 : index
    %c0_3 = arith.constant 0 : index
    %4 = vector.load %arg3[%c0_2, %c0_3] : memref<32x512xf32, #tpu.memory_space<vmem>>, vector<32x512xf32>
    %cst = arith.constant dense<0.000000e+00> : vector<16x512xf32>
    %5 = tpu.matmul %3, %4, %cst {dimension_numbers = #tpu.dot_dimension_numbers<[1], [0], [0], [1], [0, 0, 1, 1], [], []>} : vector<16x32xf32>, vector<32x512xf32>, vector<16x512xf32> -> vector<16x512xf32>
    %c0_4 = arith.constant 0 : index
    %c0_5 = arith.constant 0 : index
    %6 = vector.load %arg2[%c0_4, %c0_5] : memref<16x1xf32, #tpu.memory_space<vmem>>, vector<16x1xf32>
    %7 = vector.broadcast %6 : vector<16x1xf32> to vector<16x512xf32>
    %8 = arith.addf %5, %7 : vector<16x512xf32>
    %cst_6 = arith.constant 5.000000e+00 : f32
    %9 = vector.broadcast %cst_6 : f32 to vector<16x512xf32>
    %10 = arith.mulf %9, %8 : vector<16x512xf32>
    %11 = arith.negf %10 : vector<16x512xf32>
    %12 = math.exp %11 : vector<16x512xf32>
    %cst_7 = arith.constant 1.000000e+00 : f32
    %13 = vector.broadcast %cst_7 : f32 to vector<16x512xf32>
    %14 = arith.addf %13, %12 : vector<16x512xf32>
    %15 = arith.divf %13, %14 : vector<16x512xf32>
    %c512_i32 = arith.constant 512 : i32
    %16 = arith.muli %arg0, %c512_i32 : i32
    %17 = tpu.iota {dimensions = array<i32: 1>} : vector<16x512xi32>
    %18 = vector.broadcast %16 : i32 to vector<16x512xi32>
    %19 = arith.addi %18, %17 : vector<16x512xi32>
    %c1024_i32 = arith.constant 1024 : i32
    %20 = vector.broadcast %c1024_i32 : i32 to vector<16x512xi32>
    %21 = arith.cmpi slt, %19, %20 : vector<16x512xi32>
    %cst_8 = arith.constant 0.000000e+00 : f32
    %22 = vector.broadcast %cst_8 : f32 to vector<16x512xf32>
    %23 = arith.select %21, %15, %22 : vector<16x512xi1>, vector<16x512xf32>
    %c0_9 = arith.constant 0 : index
    %c0_10 = arith.constant 0 : index
    %24 = memref.load %arg4[%c0_9, %c0_10] : memref<1x1xf32, #tpu.memory_space<smem>>
    %25 = vector.shape_cast %23 : vector<16x512xf32> to vector<1x16x512xf32>
    %cst_11 = arith.constant dense<0.000000e+00> : vector<1xf32>
    %26 = vector.multi_reduction <add>, %25, %cst_11 [1, 2] : vector<1x16x512xf32> to vector<1xf32>
    %27 = vector.shape_cast %26 : vector<1xf32> to vector<1x1x1xf32>
    %28 = vector.extract %27[0, 0, 0] : f32 from vector<1x1x1xf32>
    %29 = arith.addf %24, %28 : f32
    %c0_12 = arith.constant 0 : index
    %c0_13 = arith.constant 0 : index
    %30 = memref.load %arg4[%c0_12, %c0_13] : memref<1x1xf32, #tpu.memory_space<smem>>
    memref.store %29, %arg4[%c0_12, %c0_13] : memref<1x1xf32, #tpu.memory_space<smem>>
    return
  }
  func.func @transform_0(%arg0: i32) -> (i32, i32) {
    %c0_i32 = arith.constant 0 : i32
    %c0_i32_0 = arith.constant 0 : i32
    %c0_i32_1 = arith.constant 0 : i32
    return %c0_i32, %c0_i32_0 : i32, i32
  }
  func.func @transform_1(%arg0: i32) -> (i32, i32) {
    %c0_i32 = arith.constant 0 : i32
    %c0_i32_0 = arith.constant 0 : i32
    %c0_i32_1 = arith.constant 0 : i32
    return %c0_i32, %c0_i32_0 : i32, i32
  }
  func.func @transform_2(%arg0: i32) -> (i32, i32) {
    %c0_i32 = arith.constant 0 : i32
    %c0_i32_0 = arith.constant 0 : i32
    return %c0_i32, %arg0 : i32, i32
  }
  func.func @transform_3(%arg0: i32) -> (i32, i32) {
    %c0_i32 = arith.constant 0 : i32
    %c0_i32_0 = arith.constant 0 : i32
    %c0_i32_1 = arith.constant 0 : i32
    return %c0_i32, %c0_i32_0 : i32, i32
  }
}

module attributes {stable_mosaic.version = 11 : i64} {
  func.func @_mask_apply_kernel(%arg0: i32, %arg1: memref<3xf32, #tpu.memory_space<smem>>, %arg2: memref<16x32xf32, #tpu.memory_space<vmem>>, %arg3: memref<16x1xf32, #tpu.memory_space<vmem>>, %arg4: memref<32x512xf32, #tpu.memory_space<vmem>>, %arg5: memref<16x512xf32, #tpu.memory_space<vmem>>, %arg6: memref<16x512xf32, #tpu.memory_space<vmem>>, %arg7: memref<16x512xf32, #tpu.memory_space<vmem>>, %arg8: memref<16x512xf32, #tpu.memory_space<vmem>>, %arg9: memref<16x512xf32, #tpu.memory_space<vmem>>, %arg10: memref<16x512xf32, #tpu.memory_space<vmem>>) attributes {dimension_semantics = [#tpu.dimension_semantics<parallel>], iteration_bounds = array<i64: 2>, scalar_prefetch = 0 : i64, scratch_operands = 0 : i64, tpu.core_type = #tpu.core_type<tc>, window_params = [{transform_indices = @transform_0, window_bounds = array<i64: 3>}, {pipeline_mode = #tpu.pipeline_mode<synchronous>, transform_indices = @transform_1, window_bounds = array<i64: 16, 32>}, {pipeline_mode = #tpu.pipeline_mode<synchronous>, transform_indices = @transform_2, window_bounds = array<i64: 16, 1>}, {transform_indices = @transform_3, window_bounds = array<i64: 32, 512>}, {transform_indices = @transform_4, window_bounds = array<i64: 16, 512>}, {transform_indices = @transform_5, window_bounds = array<i64: 16, 512>}, {transform_indices = @transform_6, window_bounds = array<i64: 16, 512>}, {transform_indices = @transform_7, window_bounds = array<i64: 16, 512>}, {transform_indices = @transform_8, window_bounds = array<i64: 16, 512>}, {transform_indices = @transform_9, window_bounds = array<i64: 16, 512>}]} {
    %c0 = arith.constant 0 : index
    %0 = memref.load %arg1[%c0] : memref<3xf32, #tpu.memory_space<smem>>
    %c1 = arith.constant 1 : index
    %1 = memref.load %arg1[%c1] : memref<3xf32, #tpu.memory_space<smem>>
    %c2 = arith.constant 2 : index
    %2 = memref.load %arg1[%c2] : memref<3xf32, #tpu.memory_space<smem>>
    %c0_0 = arith.constant 0 : index
    %c0_1 = arith.constant 0 : index
    %3 = vector.load %arg2[%c0_0, %c0_1] : memref<16x32xf32, #tpu.memory_space<vmem>>, vector<16x32xf32>
    %c0_2 = arith.constant 0 : index
    %c0_3 = arith.constant 0 : index
    %4 = vector.load %arg4[%c0_2, %c0_3] : memref<32x512xf32, #tpu.memory_space<vmem>>, vector<32x512xf32>
    %cst = arith.constant dense<0.000000e+00> : vector<16x512xf32>
    %5 = tpu.matmul %3, %4, %cst {dimension_numbers = #tpu.dot_dimension_numbers<[1], [0], [0], [1], [0, 0, 1, 1], [], []>} : vector<16x32xf32>, vector<32x512xf32>, vector<16x512xf32> -> vector<16x512xf32>
    %c0_4 = arith.constant 0 : index
    %c0_5 = arith.constant 0 : index
    %6 = vector.load %arg3[%c0_4, %c0_5] : memref<16x1xf32, #tpu.memory_space<vmem>>, vector<16x1xf32>
    %7 = vector.broadcast %6 : vector<16x1xf32> to vector<16x512xf32>
    %8 = arith.addf %5, %7 : vector<16x512xf32>
    %cst_6 = arith.constant 5.000000e+00 : f32
    %9 = vector.broadcast %cst_6 : f32 to vector<16x512xf32>
    %10 = arith.mulf %9, %8 : vector<16x512xf32>
    %11 = arith.negf %10 : vector<16x512xf32>
    %12 = math.exp %11 : vector<16x512xf32>
    %cst_7 = arith.constant 1.000000e+00 : f32
    %13 = vector.broadcast %cst_7 : f32 to vector<16x512xf32>
    %14 = arith.addf %13, %12 : vector<16x512xf32>
    %15 = arith.divf %13, %14 : vector<16x512xf32>
    %16 = vector.broadcast %2 : f32 to vector<16x512xf32>
    %17 = arith.mulf %16, %15 : vector<16x512xf32>
    %18 = vector.broadcast %0 : f32 to vector<16x512xf32>
    %19 = arith.mulf %17, %18 : vector<16x512xf32>
    %cst_8 = arith.constant 1.000000e+00 : f32
    %20 = arith.subf %cst_8, %2 : f32
    %cst_9 = arith.constant 1.000000e+00 : f32
    %21 = vector.broadcast %cst_9 : f32 to vector<16x512xf32>
    %22 = arith.subf %21, %15 : vector<16x512xf32>
    %23 = vector.broadcast %1 : f32 to vector<16x512xf32>
    %24 = arith.mulf %22, %23 : vector<16x512xf32>
    %cst_10 = arith.constant 1.000000e+00 : f32
    %25 = vector.broadcast %cst_10 : f32 to vector<16x512xf32>
    %26 = arith.subf %25, %24 : vector<16x512xf32>
    %27 = vector.broadcast %20 : f32 to vector<16x512xf32>
    %28 = arith.mulf %27, %26 : vector<16x512xf32>
    %29 = arith.addf %19, %28 : vector<16x512xf32>
    %c0_11 = arith.constant 0 : index
    %c0_12 = arith.constant 0 : index
    %30 = vector.load %arg5[%c0_11, %c0_12] : memref<16x512xf32, #tpu.memory_space<vmem>>, vector<16x512xf32>
    %31 = arith.subf %29, %30 : vector<16x512xf32>
    %cst_13 = arith.constant 1.200000e+01 : f32
    %32 = vector.broadcast %cst_13 : f32 to vector<16x512xf32>
    %33 = arith.mulf %32, %31 : vector<16x512xf32>
    %34 = arith.negf %33 : vector<16x512xf32>
    %35 = math.exp %34 : vector<16x512xf32>
    %cst_14 = arith.constant 1.000000e+00 : f32
    %36 = vector.broadcast %cst_14 : f32 to vector<16x512xf32>
    %37 = arith.addf %36, %35 : vector<16x512xf32>
    %38 = arith.divf %36, %37 : vector<16x512xf32>
    %c0_15 = arith.constant 0 : index
    %c0_16 = arith.constant 0 : index
    %39 = vector.load %arg8[%c0_15, %c0_16] : memref<16x512xf32, #tpu.memory_space<vmem>>, vector<16x512xf32>
    tpu.vector_store %arg8[%c0_15, %c0_16], %38 {strides = array<i32>} : memref<16x512xf32, #tpu.memory_space<vmem>>, vector<16x512xf32>,
    %c0_17 = arith.constant 0 : index
    %c0_18 = arith.constant 0 : index
    %40 = vector.load %arg6[%c0_17, %c0_18] : memref<16x512xf32, #tpu.memory_space<vmem>>, vector<16x512xf32>
    %41 = arith.mulf %40, %38 : vector<16x512xf32>
    %c0_19 = arith.constant 0 : index
    %c0_20 = arith.constant 0 : index
    %42 = vector.load %arg9[%c0_19, %c0_20] : memref<16x512xf32, #tpu.memory_space<vmem>>, vector<16x512xf32>
    tpu.vector_store %arg9[%c0_19, %c0_20], %41 {strides = array<i32>} : memref<16x512xf32, #tpu.memory_space<vmem>>, vector<16x512xf32>,
    %c0_21 = arith.constant 0 : index
    %c0_22 = arith.constant 0 : index
    %43 = vector.load %arg7[%c0_21, %c0_22] : memref<16x512xf32, #tpu.memory_space<vmem>>, vector<16x512xf32>
    %44 = arith.mulf %43, %38 : vector<16x512xf32>
    %c0_23 = arith.constant 0 : index
    %c0_24 = arith.constant 0 : index
    %45 = vector.load %arg10[%c0_23, %c0_24] : memref<16x512xf32, #tpu.memory_space<vmem>>, vector<16x512xf32>
    tpu.vector_store %arg10[%c0_23, %c0_24], %44 {strides = array<i32>} : memref<16x512xf32, #tpu.memory_space<vmem>>, vector<16x512xf32>,
    return
  }
  func.func @transform_0(%arg0: i32) -> i32 {
    %c0_i32 = arith.constant 0 : i32
    %c0_i32_0 = arith.constant 0 : i32
    return %c0_i32 : i32
  }
  func.func @transform_1(%arg0: i32) -> (i32, i32) {
    %c0_i32 = arith.constant 0 : i32
    %c0_i32_0 = arith.constant 0 : i32
    %c0_i32_1 = arith.constant 0 : i32
    return %c0_i32, %c0_i32_0 : i32, i32
  }
  func.func @transform_2(%arg0: i32) -> (i32, i32) {
    %c0_i32 = arith.constant 0 : i32
    %c0_i32_0 = arith.constant 0 : i32
    %c0_i32_1 = arith.constant 0 : i32
    return %c0_i32, %c0_i32_0 : i32, i32
  }
  func.func @transform_3(%arg0: i32) -> (i32, i32) {
    %c0_i32 = arith.constant 0 : i32
    %c0_i32_0 = arith.constant 0 : i32
    return %c0_i32, %arg0 : i32, i32
  }
  func.func @transform_4(%arg0: i32) -> (i32, i32) {
    %c0_i32 = arith.constant 0 : i32
    %c0_i32_0 = arith.constant 0 : i32
    return %c0_i32, %arg0 : i32, i32
  }
  func.func @transform_5(%arg0: i32) -> (i32, i32) {
    %c0_i32 = arith.constant 0 : i32
    %c0_i32_0 = arith.constant 0 : i32
    return %c0_i32, %arg0 : i32, i32
  }
  func.func @transform_6(%arg0: i32) -> (i32, i32) {
    %c0_i32 = arith.constant 0 : i32
    %c0_i32_0 = arith.constant 0 : i32
    return %c0_i32, %arg0 : i32, i32
  }
  func.func @transform_7(%arg0: i32) -> (i32, i32) {
    %c0_i32 = arith.constant 0 : i32
    %c0_i32_0 = arith.constant 0 : i32
    return %c0_i32, %arg0 : i32, i32
  }
  func.func @transform_8(%arg0: i32) -> (i32, i32) {
    %c0_i32 = arith.constant 0 : i32
    %c0_i32_0 = arith.constant 0 : i32
    return %c0_i32, %arg0 : i32, i32
  }
  func.func @transform_9(%arg0: i32) -> (i32, i32) {
    %c0_i32 = arith.constant 0 : i32
    %c0_i32_0 = arith.constant 0 : i32
    return %c0_i32, %arg0 : i32, i32
  }
}

module attributes {stable_mosaic.version = 11 : i64} {
  func.func @_rss_sens_kernel(%arg0: i32, %arg1: memref<16x4x128xf32, #tpu.memory_space<vmem>>, %arg2: memref<16x4x128xf32, #tpu.memory_space<vmem>>, %arg3: memref<16x128xf32, #tpu.memory_space<vmem>>, %arg4: memref<16x4x128xf32, #tpu.memory_space<vmem>>, %arg5: memref<16x4x128xf32, #tpu.memory_space<vmem>>) attributes {dimension_semantics = [#tpu.dimension_semantics<parallel>], iteration_bounds = array<i64: 2>, scalar_prefetch = 0 : i64, scratch_operands = 0 : i64, tpu.core_type = #tpu.core_type<tc>, window_params = [{transform_indices = @transform_0, window_bounds = array<i64: 16, 4, 128>}, {transform_indices = @transform_1, window_bounds = array<i64: 16, 4, 128>}, {transform_indices = @transform_2, window_bounds = array<i64: 16, 128>}, {transform_indices = @transform_3, window_bounds = array<i64: 16, 4, 128>}, {transform_indices = @transform_4, window_bounds = array<i64: 16, 4, 128>}]} {
    %c0 = arith.constant 0 : index
    %c0_0 = arith.constant 0 : index
    %c0_1 = arith.constant 0 : index
    %0 = vector.load %arg1[%c0, %c0_0, %c0_1] : memref<16x4x128xf32, #tpu.memory_space<vmem>>, vector<16x4x128xf32>
    %c0_2 = arith.constant 0 : index
    %c0_3 = arith.constant 0 : index
    %c0_4 = arith.constant 0 : index
    %1 = vector.load %arg2[%c0_2, %c0_3, %c0_4] : memref<16x4x128xf32, #tpu.memory_space<vmem>>, vector<16x4x128xf32>
    %2 = arith.mulf %0, %0 : vector<16x4x128xf32>
    %3 = arith.mulf %1, %1 : vector<16x4x128xf32>
    %4 = arith.addf %2, %3 : vector<16x4x128xf32>
    %cst = arith.constant dense<0.000000e+00> : vector<16x128xf32>
    %5 = vector.multi_reduction <add>, %4, %cst [1] : vector<16x4x128xf32> to vector<16x128xf32>
    %6 = math.sqrt %5 : vector<16x128xf32>
    %c0_5 = arith.constant 0 : index
    %c0_6 = arith.constant 0 : index
    %7 = vector.load %arg3[%c0_5, %c0_6] : memref<16x128xf32, #tpu.memory_space<vmem>>, vector<16x128xf32>
    tpu.vector_store %arg3[%c0_5, %c0_6], %6 {strides = array<i32>} : memref<16x128xf32, #tpu.memory_space<vmem>>, vector<16x128xf32>,
    %cst_7 = arith.constant 1.000000e-30 : f32
    %8 = vector.broadcast %cst_7 : f32 to vector<16x128xf32>
    %9 = arith.addf %5, %8 : vector<16x128xf32>
    %10 = math.rsqrt %9 : vector<16x128xf32>
    %11 = vector.shape_cast %10 : vector<16x128xf32> to vector<16x1x128xf32>
    %12 = vector.broadcast %11 : vector<16x1x128xf32> to vector<16x4x128xf32>
    %13 = arith.mulf %0, %12 : vector<16x4x128xf32>
    %c0_8 = arith.constant 0 : index
    %c0_9 = arith.constant 0 : index
    %c0_10 = arith.constant 0 : index
    %14 = vector.load %arg4[%c0_8, %c0_9, %c0_10] : memref<16x4x128xf32, #tpu.memory_space<vmem>>, vector<16x4x128xf32>
    tpu.vector_store %arg4[%c0_8, %c0_9, %c0_10], %13 {strides = array<i32>} : memref<16x4x128xf32, #tpu.memory_space<vmem>>, vector<16x4x128xf32>,
    %15 = vector.broadcast %11 : vector<16x1x128xf32> to vector<16x4x128xf32>
    %16 = arith.mulf %1, %15 : vector<16x4x128xf32>
    %c0_11 = arith.constant 0 : index
    %c0_12 = arith.constant 0 : index
    %c0_13 = arith.constant 0 : index
    %17 = vector.load %arg5[%c0_11, %c0_12, %c0_13] : memref<16x4x128xf32, #tpu.memory_space<vmem>>, vector<16x4x128xf32>
    tpu.vector_store %arg5[%c0_11, %c0_12, %c0_13], %16 {strides = array<i32>} : memref<16x4x128xf32, #tpu.memory_space<vmem>>, vector<16x4x128xf32>,
    return
  }
  func.func @transform_0(%arg0: i32) -> (i32, i32, i32) {
    %c0_i32 = arith.constant 0 : i32
    %c0_i32_0 = arith.constant 0 : i32
    %c0_i32_1 = arith.constant 0 : i32
    return %c0_i32, %c0_i32_0, %arg0 : i32, i32, i32
  }
  func.func @transform_1(%arg0: i32) -> (i32, i32, i32) {
    %c0_i32 = arith.constant 0 : i32
    %c0_i32_0 = arith.constant 0 : i32
    %c0_i32_1 = arith.constant 0 : i32
    return %c0_i32, %c0_i32_0, %arg0 : i32, i32, i32
  }
  func.func @transform_2(%arg0: i32) -> (i32, i32) {
    %c0_i32 = arith.constant 0 : i32
    %c0_i32_0 = arith.constant 0 : i32
    return %c0_i32, %arg0 : i32, i32
  }
  func.func @transform_3(%arg0: i32) -> (i32, i32, i32) {
    %c0_i32 = arith.constant 0 : i32
    %c0_i32_0 = arith.constant 0 : i32
    %c0_i32_1 = arith.constant 0 : i32
    return %c0_i32, %c0_i32_0, %arg0 : i32, i32, i32
  }
  func.func @transform_4(%arg0: i32) -> (i32, i32, i32) {
    %c0_i32 = arith.constant 0 : i32
    %c0_i32_0 = arith.constant 0 : i32
    %c0_i32_1 = arith.constant 0 : i32
    return %c0_i32, %c0_i32_0, %arg0 : i32, i32, i32
  }
}

</mosaic_0001>

<bundles_post_ra>
// kernel: memc_loupe_forward.3
= control target key start
LH: loop header
LB: loop body
LE: loop exit
PB: predicated region body
PF: predicated region fallthrough
CT: control target
= control target key end

     0   :  { %8 = vsyncpa [#allocation4], 0  ;;  %s716_s12 = smov 0   ;;  %s718_s13 = smov 0   ;;  %s809_s0 = inlined_call_operand.vmem [shape: f32[16,32], index: 0, kind: input, shape index: {}]   ;;  %s810_s1 = inlined_call_operand.vmem [shape: f32[16,1], index: 1, kind: input, shape index: {}]   ;;  %s811_s2 = inlined_call_operand.vmem [shape: f32[32,1024], index: 2, kind: input, shape index: {}]   ;;  %s812_s3 = inlined_call_operand.hbm [shape: f32[1,1], index: 3, kind: output, shape index: {}]  }
   0x1   :  { %s720_s14 = smov 0  }
   0x2 LB: > { %s732_s15 = sadd.s32 4294967295, %s690_s14   ;;  %s735_s16 = sadd.s32 1, %s690_s14   ;;  %s690_s14 = sphi %s720_s14, %s815_s14   ;;  %s686_s13 = sphi %s718_s13, %s814_s13   ;;  %s682_s12 = sphi %s716_s12, %s813_s12  }
   0x3   : > { %s60_s17 = ssub.s32 %s690_s14, %s735_s16  ;;  %s63_s18 = sadd.s32 1, %s686_s13 }
   0x4   : > { %p61_p0 = scmp.eq.s32.totalorder %s60_s17, 0  ;;  %p70_p1 = scmp.ne.s32.totalorder %s686_s13, %s682_s12 }
   0x5   : > { %p71_p2 = scmp.eq.s32.totalorder %s690_s14, 0  ;;  %p557_p4 = scmp.ge.s32.totalorder %s690_s14, 2 }
   0x6   : > { %s744_s19 = scalar_select %p61_p0, %s686_s13, %s63_s18  }
   0x7   : > { %p72_p3 = por %p71_p2, %p70_p1  ;;  %123 = sbr.rel (%p557_p4) target bundleno = 24 (0x18), region = 24 }
   0xc   : > { %126 = sbr.rel (!%p72_p3) target bundleno = 24 (0x18), region = 28  ;;  %s128_s20 = sand.u32 (%p72_p3), 1, %s686_s13  }
   0xd   : > { %s581_s21 = sshll.u32 (%p72_p3), %s690_s14, 5  ;;  %s558_s22 = sshll.u32 (%p72_p3), %s128_s20, 7 }
   0xe   : > { %s752_s25 = scalar_lea.vmem (%p72_p3), %s811_s2, %s581_s21  ;;  %s130_s26 = scalar_lea.vmem (%p72_p3), [#allocation2], %s558_s22 }
   0xf   : > { %v146_v0 = vld [vmem:[%s752_s25] sm:$0xff] (%p72_p3)  ;;  %v148_v1 = vld [vmem:[%s752_s25 + $0x8] sm:$0xff] (%p72_p3)  ;;  %v150_v2 = vld [vmem:[%s752_s25 + $0x10] sm:$0xff] (%p72_p3) }
  0x10   : > { %147 = vst [vmem:[%s130_s26] sm:$0xff] (%p72_p3), %v146_v0  ;;  %149 = vst [vmem:[%s130_s26 + $0x8] sm:$0xff] (%p72_p3), %v148_v1  ;;  %v152_v3 = vld [vmem:[%s752_s25 + $0x18] sm:$0xff] (%p72_p3)  ;;  %v154_v4 = vld [vmem:[%s752_s25 + $0x40] sm:$0xff] (%p72_p3) }
  0x11   : > { %151 = vst [vmem:[%s130_s26 + $0x10] sm:$0xff] %v150_v2  ;;  %v156_v5 = vld [vmem:[%s752_s25 + $0x48] sm:$0xff]  ;;  %153 = vst [vmem:[%s130_s26 + $0x18] sm:$0xff] %v152_v3  ;;  %v158_v6 = vld [vmem:[%s752_s25 + $0x50] sm:$0xff] }
  0x12   : > { %155 = vst [vmem:[%s130_s26 + $0x20] sm:$0xff] %v154_v4  ;;  %157 = vst [vmem:[%s130_s26 + $0x28] sm:$0xff] %v156_v5  ;;  %v160_v7 = vld [vmem:[%s752_s25 + $0x58] sm:$0xff]  ;;  %v162_v8 = vld [vmem:[%s752_s25 + $0x80] sm:$0xff] }
  0x13   : > { %159 = vst [vmem:[%s130_s26 + $0x30] sm:$0xff] %v158_v6  ;;  %161 = vst [vmem:[%s130_s26 + $0x38] sm:$0xff] %v160_v7  ;;  %v164_v9 = vld [vmem:[%s752_s25 + $0x88] sm:$0xff]  ;;  %v166_v10 = vld [vmem:[%s752_s25 + $0x90] sm:$0xff] }
  0x14   : > { %163 = vst [vmem:[%s130_s26 + $0x40] sm:$0xff] %v162_v8  ;;  %v168_v11 = vld [vmem:[%s752_s25 + $0x98] sm:$0xff]  ;;  %165 = vst [vmem:[%s130_s26 + $0x48] sm:$0xff] %v164_v9  ;;  %v170_v12 = vld [vmem:[%s752_s25 + $0xc0] sm:$0xff] }
  0x15   : > { %167 = vst [vmem:[%s130_s26 + $0x50] sm:$0xff] %v166_v10  ;;  %169 = vst [vmem:[%s130_s26 + $0x58] sm:$0xff] %v168_v11  ;;  %v172_v13 = vld [vmem:[%s752_s25 + $0xc8] sm:$0xff]  ;;  %v174_v14 = vld [vmem:[%s752_s25 + $0xd0] sm:$0xff] }
  0x16   : > { %171 = vst [vmem:[%s130_s26 + $0x60] sm:$0xff] %v170_v12  ;;  %173 = vst [vmem:[%s130_s26 + $0x68] sm:$0xff] %v172_v13  ;;  %v176_v15 = vld [vmem:[%s752_s25 + $0xd8] sm:$0xff] }
  0x17   : > { %175 = vst [vmem:[%s130_s26 + $0x70] sm:$0xff] %v174_v14  ;;  %177 = vst [vmem:[%s130_s26 + $0x78] sm:$0xff] %v176_v15 }
  0x18 PF: > { %p561_p5 = scmp.ge.s32.totalorder %s690_s14, 1  ;;  %p182_p6 = scmp.lt.s32.totalorder %s690_s14, 3 }
  0x1a   : > { %p183_p7 = pnand %p561_p5, %p182_p6 }
  0x1b   : > { %s189_s27 = sand.u32 (!%p183_p7), 1, %s682_s12   ;;  %s576_s11 = sshll.u32 (!%p183_p7), %s732_s15, 9 }
  0x1c   : > { %186 = sbr.rel (%p183_p7) target bundleno = 497 (0x1f1), region = 51  ;;  %s562_s28 = sshll.u32 (!%p183_p7), %s189_s27, 7 }
  0x1d   : > { %s191_s4 = scalar_lea.vmem (!%p183_p7), [#allocation2], %s562_s28  ;;  %p590_p8 = scmp.eq.s32.totalorder (!%p183_p7), %s732_s15, 0 }
  0x1e   : > { %s694_s12 = smov (!%p183_p7), 0.0   ;;  %p591_p9 = scmp.eq.s32.totalorder (!%p183_p7), %s732_s15, 1 }
  0x1f   : > { %s695_s20 = smov (!%p183_p7), [#allocation3]  }
  0x21   : > { %v692_v16 = vmov 0.0   ;;  %v232_v17 = vld [vmem:[%s810_s1] sm:$0xff]  ;;  %v693_v18 = vmov 0   ;;  %v229_v19 = vld [vmem:[%s191_s4 + $0x68] sm:$0xff]  ;;  %v231_v20 = vld [vmem:[%s191_s4 + $0x78] sm:$0xff]  ;;  %vm244_vm0 = vcmask 261120   ;;  %v462_v9 = vlaneseq }
  0x22   : > { %315 = vmatprep.mubr.f32.mxu0 %v692_v16  ;;  %392 = vmatprep.mubr.f32.mxu1 %v692_v16  ;;  %v228_v21 = vld [vmem:[%s191_s4 + $0x60] sm:$0xff]  ;;  %v230_v22 = vld [vmem:[%s191_s4 + $0x70] sm:$0xff]  ;;  %v225_v23 = vld [vmem:[%s191_s4 + $0x48] sm:$0xff]  ;;  %585 = sst [smem:[#allocation3]] (%p590_p8), %s694_s12 }
  0x23   : > { %621 = vset.pattern.permute.xlu0 %v693_v18  ;;  %275 = vmatprep.subr.mxu0 %v229_v19  ;;  %v227_v24 = vld [vmem:[%s191_s4 + $0x58] sm:$0xff]  ;;  %v224_v25 = vld [vmem:[%s191_s4 + $0x40] sm:$0xff]  ;;  %v226_v26 = vld [vmem:[%s191_s4 + $0x50] sm:$0xff]  ;;  %s484_s14 = sld [smem:[#allocation3]] }
  0x24   : > { %236 = vperm.xlu0 %621, %v232_v17   ;;  %352 = vmatprep.subr.mxu1 %v231_v20  ;;  %v221_v27 = vld [vmem:[%s191_s4 + $0x28] sm:$0xff]  ;;  %v223_v28 = vld [vmem:[%s191_s4 + $0x38] sm:$0xff]  ;;  %v220_v29 = vld [vmem:[%s191_s4 + $0x20] sm:$0xff]  ;;  %v463_v17 = vand.u32 127, %v462_v9 }
  0x25   : > { %276 = vmatpush1.msra.mxu0 %v228_v21  ;;  %353 = vmatpush1.msra.mxu1 %v230_v22  ;;  %v222_v30 = vld [vmem:[%s191_s4 + $0x30] sm:$0xff]  ;;  %v217_v31 = vld [vmem:[%s191_s4 + $0x8] sm:$0xff]  ;;  %v219_v32 = vld [vmem:[%s191_s4 + $0x18] sm:$0xff] }
  0x26   : > { %277 = vmatprep.subr.mxu0 %v225_v23  ;;  %354 = vmatprep.subr.mxu1 %v227_v24  ;;  %v216_v33 = vld [vmem:[%s191_s4] sm:$0xff]  ;;  %v218_v34 = vld [vmem:[%s191_s4 + $0x10] sm:$0xff]  ;;  %v233_v36 = vld [vmem:[%s810_s1 + $0x8] sm:$0xff]  ;;  %v464_v24 = vadd.s32 128, %v463_v17 }
  0x27   : > { %278 = vmatpush1.msra.mxu0 %v224_v25  ;;  %355 = vmatpush1.msra.mxu1 %v226_v26  ;;  %v214_v35 = vld [vmem:[%s809_s0] sm:$0xff]  ;;  %v215_v37 = vld [vmem:[%s809_s0 + $0x8] sm:$0xff]  ;;  %v467_v26 = vstv %s576_s11 }
  0x28   : > { %279 = vmatprep.subr.mxu0 %v221_v27  ;;  %356 = vmatprep.subr.mxu1 %v223_v28  ;;  %v465_v27 = vadd.s32 256, %v463_v17 }
  0x29   : > { %280 = vmatpush1.msra.mxu0 %v220_v29  ;;  %357 = vmatpush1.msra.mxu1 %v222_v30  ;;  %v466_v29 = vadd.s32 384, %v463_v17  ;;  %v468_v30 = vadd.s32 %v467_v26, %v463_v17 }
  0x2a   : > { %281 = vmatprep.subr.mxu0 %v217_v31  ;;  %358 = vmatprep.subr.mxu1 %v219_v32  ;;  %v469_v31 = vadd.s32 %v467_v26, %v464_v24  ;;  %v470_v32 = vadd.s32 %v467_v26, %v465_v27 }
  0x2b   : > { %282 = vmatpush1.msra.mxu0 %v216_v33  ;;  %359 = vmatpush1.msra.mxu1 %v218_v34  ;;  %v471_v34 = vadd.s32 %v467_v26, %v466_v29  ;;  %vm472_vm1 = vcmp.lt.s32.totalorder %v468_v30, 1024 }
  0x2c   : > { %564 = vmatmul.mubr.msk.f32.vlgmr.msra.gmra.mxu0 %vm244_vm0, %v214_v35  ;;  %566 = vmatmul.mubr.msk.f32.vlgmr.msra.gmra.mxu1 %vm244_vm0, %v214_v35  ;;  %vm473_vm2 = vcmp.lt.s32.totalorder %v469_v31, 1024  ;;  %vm474_vm3 = vcmp.lt.s32.totalorder %v470_v32, 1024 }
  0x2d   : > { %321 = vmatprep.mubr.f32.mxu0 %v692_v16  ;;  %398 = vmatprep.mubr.f32.mxu1 %v692_v16  ;;  %vm475_vm4 = vcmp.lt.s32.totalorder %v471_v34, 1024 }
  0x2e   : > { %241 = vperm.xlu0 %621, %v233_v36  }
  0x30   : > { %565 = vmatmul.mubr.msk.f32.gmra.mxu0 %vm244_vm0, %v215_v37  ;;  %567 = vmatmul.mubr.msk.f32.gmra.mxu1 %vm244_vm0, %v215_v37 }
  0x9f   : > { %v237_v38 = vpop.permute.xlu0 %236 }
  0xa9   : > { %v242_v53 = vpop.permute.xlu0 %241 }
  0xec   : > { %v317_v39 = vpop.f32.mrf.mxu0  ;;  %v394_v40 = vpop.f32.mrf.mxu1 }
  0xed   : > { %v318_v41 = vadd.f32 %v317_v39, %v237_v38  ;;  %v395_v42 = vadd.f32 %v394_v40, %v237_v38 }
  0xee   : > { %v319_v43 = vpop.f32.mrf.mxu0  ;;  %v396_v44 = vpop.f32.mrf.mxu1 }
  0xef   : > { %v568_v45 = vmul.f32 -5.0, %v318_v41  ;;  %v570_v46 = vmul.f32 -5.0, %v395_v42  ;;  %v320_v47 = vadd.f32 %v319_v43, %v237_v38  ;;  %v397_v48 = vadd.f32 %v396_v44, %v237_v38 }
  0xf0   : > { %v323_v49 = vpop.f32.mrf.mxu0  ;;  %v400_v50 = vpop.f32.mrf.mxu1 }
  0xf1   : > { %v421_v51 = vmul.f32 1.442695, %v568_v45  ;;  %v425_v52 = vmul.f32 1.442695, %v570_v46  ;;  %v569_v54 = vmul.f32 -5.0, %v320_v47  ;;  %v571_v55 = vmul.f32 -5.0, %v397_v48 }
  0xf2   : > { %v324_v56 = vadd.f32 %v323_v49, %v242_v53  ;;  %v401_v57 = vadd.f32 %v400_v50, %v242_v53  ;;  %v325_v58 = vpop.f32.mrf.mxu0  ;;  %v402_v59 = vpop.f32.mrf.mxu1 }
  0xf3   : > { %622 = vpow2.f32 %v421_v51  ;;  %v423_v60 = vmul.f32 1.442695, %v569_v54  ;;  %v427_v61 = vmul.f32 1.442695, %v571_v55  ;;  %v326_v62 = vadd.f32 %v325_v58, %v242_v53 }
  0xf4   : > { %624 = vpow2.f32 %v425_v52  ;;  %v572_v63 = vmul.f32 -5.0, %v324_v56  ;;  %v574_v0 = vmul.f32 -5.0, %v401_v57  ;;  %v403_v1 = vadd.f32 %v402_v59, %v242_v53 }
  0xf5   : > { %626 = vpow2.f32 %v423_v60  ;;  %v573_v2 = vmul.f32 -5.0, %v326_v62 }
  0xf6   : > { %628 = vpow2.f32 %v427_v61  ;;  %v429_v3 = vmul.f32 1.442695, %v572_v63  ;;  %v433_v4 = vmul.f32 1.442695, %v574_v0  ;;  %v575_v5 = vmul.f32 -5.0, %v403_v1 }
  0xf7   : > { %v431_v6 = vmul.f32 1.442695, %v573_v2 }
  0xf8   : > { %630 = vpow2.f32 %v429_v3  ;;  %v435_v7 = vmul.f32 1.442695, %v575_v5 }
  0xf9   : > { %632 = vpow2.f32 %v433_v4 }
  0xfa   : > { %634 = vpow2.f32 %v431_v6 }
  0xfb   : > { %636 = vpow2.f32 %v435_v7 }
 0x100   : > { %v623_v8 = vpop.eup %622 }
 0x101   : > { %v625_v10 = vpop.eup %624  ;;  %v437_v11 = vadd.f32 1.0, %v623_v8 }
 0x102   : > { %v627_v12 = vpop.eup %626  ;;  %v439_v13 = vadd.f32 1.0, %v625_v10 }
 0x103   : > { %v629_v14 = vpop.eup %628  ;;  %638 = vrcp.f32 %v437_v11  ;;  %v438_v15 = vadd.f32 1.0, %v627_v12 }
 0x104   : > { %640 = vrcp.f32 %v439_v13  ;;  %v440_v16 = vadd.f32 1.0, %v629_v14 }
 0x105   : > { %v631_v18 = vpop.eup %630  ;;  %642 = vrcp.f32 %v438_v15 }
 0x106   : > { %v633_v19 = vpop.eup %632  ;;  %v441_v20 = vadd.f32 1.0, %v631_v18  ;;  %644 = vrcp.f32 %v440_v16 }
 0x107   : > { %v635_v21 = vpop.eup %634  ;;  %v443_v25 = vadd.f32 1.0, %v633_v19 }
 0x108   : > { %v637_v22 = vpop.eup %636  ;;  %v442_v23 = vadd.f32 1.0, %v635_v21  ;;  %646 = vrcp.f32 %v441_v20 }
 0x109   : > { %v444_v28 = vadd.f32 1.0, %v637_v22 }
 0x10a   : > { %648 = vrcp.f32 %v442_v23 }
 0x10b   : > { %650 = vrcp.f32 %v443_v25 }
 0x10c   : > { %652 = vrcp.f32 %v444_v28 }
 0x110   : > { %v639_v33 = vpop.eup %638 }
 0x111   : > { %v641_v35 = vpop.eup %640  ;;  %v476_v37 = vsel %vm472_vm1, %v639_v33, 0.0 }
 0x112   : > { %v643_v36 = vpop.eup %642  ;;  %v478_v41 = vsel %vm474_vm3, %v641_v35, 0.0 }
 0x113   : > { %v477_v38 = vsel %vm473_vm2, %v643_v36, 0.0  ;;  %v645_v39 = vpop.eup %644 }
 0x114   : > { %v485_v40 = vadd.f32 %v477_v38, %v476_v37  ;;  %v479_v44 = vsel %vm475_vm4, %v645_v39, 0.0 }
 0x115   : > { %v647_v42 = vpop.eup %646 }
 0x116   : > { %v486_v43 = vadd.f32 %v485_v40, %v478_v41  ;;  %v480_v47 = vsel %vm472_vm1, %v647_v42, 0.0 }
 0x117   : > { %v649_v45 = vpop.eup %648 }
 0x118   : > { %v487_v46 = vadd.f32 %v486_v43, %v479_v44  ;;  %v651_v48 = vpop.eup %650  ;;  %v481_v50 = vsel %vm473_vm2, %v649_v45, 0.0 }
 0x119   : > { %v653_v51 = vpop.eup %652  ;;  %v482_v53 = vsel %vm474_vm3, %v651_v48, 0.0 }
 0x11a   : > { %v488_v49 = vadd.f32 %v487_v46, %v480_v47  ;;  %v483_v55 = vsel %vm475_vm4, %v653_v51, 0.0 }
 0x11c   : > { %v489_v52 = vadd.f32 %v488_v49, %v481_v50 }
 0x11e   : > { %v490_v54 = vadd.f32 %v489_v52, %v482_v53 }
 0x120   : > { %v491_v56 = vadd.f32 %v490_v54, %v483_v55 }
 0x122   : > { %492 = vadd.xlane.f32.xlu1 %v491_v56 }
 0x1ab   : > { %v493_v57 = vpop.xlane.xlu1 %492 }
 0x1ac   : > { %v494_v58 = vrot.slane %v493_v57, 4 }
 0x1ae   : > { %v495_v59 = vadd.f32 %v494_v58, %v493_v57 }
 0x1b0   : > { %v496_v60 = vrot.slane %v495_v59, 2 }
 0x1b2   : > { %v497_v61 = vadd.f32 %v496_v60, %v495_v59 }
 0x1b4   : > { %v498_v62 = vrot.slane %v497_v61, 1 }
 0x1b6   : > { %v499_v63 = vadd.f32 %v498_v62, %v497_v61 }
 0x1b8   : > { %582 = vpush %v499_v63 }
 0x1e9   : > { %s583_s17 = spop %582 }
 0x1ea   : > { %s501_s18 = sadd.f32 %s583_s17, %s484_s14 }
 0x1ec   : > { %503 = sst [smem:[#allocation3]] %s501_s18 }
 0x1ed   : > { %587 = dma.smem_to_hbm (%p591_p9), %s695_s20, 16, %s812_s3, [#allocation4]  }
 0x1ee   : > { %677 = dma.done.wait (%p591_p9), [#allocation4], 16  }
 0x1ef   : > { %679 = vsyncadd (%p591_p9), [#allocation4], 4294967280 }
 0x1f0   : > { %517 = sfence }
 0x1f1 PF: > { %p11_p10 = scmp.ge.s32.totalorder %s735_s16, 4   ;;  %s813_s12 = smov %s686_s13 }
 0x1f2   : > { %s814_s13 = smov %s744_s19  ;;  %s815_s14 = smov %s735_s16 }
 0x1f3   :  { %13 = sbr.rel (!%p11_p10) target bundleno = 2 (0x2), region = 93 }
 0x1f8   :  { %523 = vsyncpa [#allocation4], 1 }
 0x1f9   :  { %525 = vsyncpa [#allocation4 + $0x1], 1 }

// kernel: memc_loupe_forward.4
= control target key start
LH: loop header
LB: loop body
LE: loop exit
PB: predicated region body
PF: predicated region fallthrough
CT: control target
= control target key end

     0   :  { %15 = vsyncpa [#allocation3], 0  ;;  %s1577_s30 = smov 0   ;;  %s1579_s10 = smov 0   ;;  %s1882_s0 = inlined_call_operand.vmem [shape: f32[3], index: 0, kind: input, shape index: {}]   ;;  %s1883_s1 = inlined_call_operand.vmem [shape: f32[16,32], index: 1, kind: input, shape index: {}]   ;;  %s1884_s2 = inlined_call_operand.vmem [shape: f32[16,1], index: 2, kind: input, shape index: {}]   ;;  %s1885_s3 = inlined_call_operand.vmem [shape: f32[32,1024], index: 3, kind: input, shape index: {}]   ;;  %s1886_s4 = inlined_call_operand.vmem [shape: f32[16,1024], index: 4, kind: input, shape index: {}]   ;;  %s1887_s5 = inlined_call_operand.vmem [shape: f32[16,1024], index: 5, kind: input, shape index: {}]   ;;  %s1888_s6 = inlined_call_operand.vmem [shape: f32[16,1024], index: 6, kind: input, shape index: {}]   ;;  %s1889_s7 = inlined_call_operand.vmem [shape: f32[16,1024], index: 7, kind: output, shape index: {0}]   ;;  %s1890_s8 = inlined_call_operand.vmem [shape: f32[16,1024], index: 8, kind: output, shape index: {1}]   ;;  %s1891_s9 = inlined_call_operand.vmem [shape: f32[16,1024], index: 9, kind: output, shape index: {2}]  }
   0x1   :  { %s1581_s11 = smov 0  }
   0x2 LB: > { %s1593_s12 = sadd.s32 4294967295, %s1522_s11   ;;  %s1596_s13 = sadd.s32 1, %s1522_s11   ;;  %s1522_s11 = sphi %s1581_s11, %s1900_s11   ;;  %s1518_s10 = sphi %s1579_s10, %s1899_s10   ;;  %s1514_s30 = sphi %s1577_s30, %s1898_s30  }
   0x3   : > { %s88_s14 = ssub.s32 %s1522_s11, %s1596_s13  ;;  %s91_s15 = sadd.s32 1, %s1518_s10 }
   0x4   : > { %p89_p0 = scmp.eq.s32.totalorder %s88_s14, 0  ;;  %p98_p1 = scmp.ne.s32.totalorder %s1518_s10, %s1514_s30 }
   0x5   : > { %p99_p2 = scmp.eq.s32.totalorder %s1522_s11, 0  ;;  %p206_p3 = scmp.eq.s32.totalorder %s1593_s12, 1 }
   0x6   : > { %s1606_s16 = scalar_select %p89_p0, %s1518_s10, %s91_s15  }
   0x7   : > { %p1608_p4 = por %p99_p2, %p98_p1  ;;  %p1612_p5 = por %p206_p3, %p98_p1 }
   0x8   : > { %p1315_p6 = scmp.ge.s32.totalorder %s1522_s11, 1  ;;  %p271_p7 = scmp.lt.s32.totalorder %s1522_s11, 3 }
   0x9   : > { %s1893_s18 = scalar_select %p1612_p5, 1, 0 }
   0xa   : > { %p1387_p8 = scmp.eq.s32.totalorder %s1593_s12, 0  ;;  %p1619_p9 = pnand %p1315_p6, %p271_p7 }
   0xb   : > { %s284_s22 = sshll.u32 %s1882_s0, 4  ;;  %s285_s22 = int_to_ptr.vmem [resolvable:$true] %s284_s22 }
   0xc   : > { %p1383_p10 = pneg %p1619_p9  ;;  %s1481_s23 = scalar_lea.vmem %s285_s22, 16 }
   0xd   : > { %p1482_p12 = scmp.ne.s32.totalorder %s285_s22, %s1481_s23  ;;  %p1489_p2 = scmp.lt.s32.totalorder %s285_s22, %s285_s22 }
   0xe   : > { %p1384_p11 = pnand %p1387_p8, %p1383_p10  ;;  %p1490_p3 = scmp.lt.s32.totalorder %s1481_s23, %s1481_s23 }
  0x10   : > { %p1483_p13 = pneg %p1384_p11  ;;  %p1491_p6 = por %p1490_p3, %p1489_p2 }
  0x12   : > { %p1484_p0 = pnand %p1483_p13, %p1482_p12 }
  0x14   : > { %p1485_p1 = pneg %p1484_p0 }
  0x16   : > { %p1492_p7 = pnand %p1491_p6, %p1485_p1 }
  0x18   : > { %1495 = shalt.err (!%p1492_p7)
}
  0x19   : > { %s1524_s24 = smov [#allocation2]   ;;  %p1317_p5 = scmp.ge.s32.totalorder %s1522_s11, 2 }
  0x1a   : > { %1386 = dma.vmem_to_smem (!%p1384_p11), %s285_s22, 16, %s1524_s24, [#allocation3]  }
  0x1b   : > { %297 = sbr.rel (%p1317_p5) target bundleno = 68 (0x44), region = 28 }
  0x20   : > { %300 = sbr.rel (!%p1608_p4) target bundleno = 44 (0x2c), region = 32  ;;  %s302_s25 = sand.u32 (%p1608_p4), 1, %s1518_s10  }
  0x21   : > { %s1372_s26 = sshll.u32 (%p1608_p4), %s1522_s11, 5  ;;  %s1318_s27 = sshll.u32 (%p1608_p4), %s302_s25, 7 }
  0x22   : > { %s1638_s14 = scalar_lea.vmem (%p1608_p4), %s1885_s3, %s1372_s26  ;;  %s304_s15 = scalar_lea.vmem (%p1608_p4), [#allocation4], %s1318_s27 }
  0x23   : > { %v320_v0 = vld [vmem:[%s1638_s14] sm:$0xff] (%p1608_p4)  ;;  %v322_v1 = vld [vmem:[%s1638_s14 + $0x8] sm:$0xff] (%p1608_p4)  ;;  %v324_v2 = vld [vmem:[%s1638_s14 + $0x10] sm:$0xff] (%p1608_p4) }
  0x24   : > { %321 = vst [vmem:[%s304_s15] sm:$0xff] (%p1608_p4), %v320_v0  ;;  %323 = vst [vmem:[%s304_s15 + $0x8] sm:$0xff] (%p1608_p4), %v322_v1  ;;  %v326_v3 = vld [vmem:[%s1638_s14 + $0x18] sm:$0xff] (%p1608_p4)  ;;  %v328_v4 = vld [vmem:[%s1638_s14 + $0x40] sm:$0xff] (%p1608_p4) }
  0x25   : > { %325 = vst [vmem:[%s304_s15 + $0x10] sm:$0xff] %v324_v2  ;;  %v330_v5 = vld [vmem:[%s1638_s14 + $0x48] sm:$0xff]  ;;  %327 = vst [vmem:[%s304_s15 + $0x18] sm:$0xff] %v326_v3  ;;  %v332_v6 = vld [vmem:[%s1638_s14 + $0x50] sm:$0xff] }
  0x26   : > { %329 = vst [vmem:[%s304_s15 + $0x20] sm:$0xff] %v328_v4  ;;  %331 = vst [vmem:[%s304_s15 + $0x28] sm:$0xff] %v330_v5  ;;  %v334_v7 = vld [vmem:[%s1638_s14 + $0x58] sm:$0xff]  ;;  %v336_v8 = vld [vmem:[%s1638_s14 + $0x80] sm:$0xff] }
  0x27   : > { %333 = vst [vmem:[%s304_s15 + $0x30] sm:$0xff] %v332_v6  ;;  %335 = vst [vmem:[%s304_s15 + $0x38] sm:$0xff] %v334_v7  ;;  %v338_v9 = vld [vmem:[%s1638_s14 + $0x88] sm:$0xff]  ;;  %v340_v10 = vld [vmem:[%s1638_s14 + $0x90] sm:$0xff] }
  0x28   : > { %337 = vst [vmem:[%s304_s15 + $0x40] sm:$0xff] %v336_v8  ;;  %v342_v11 = vld [vmem:[%s1638_s14 + $0x98] sm:$0xff]  ;;  %339 = vst [vmem:[%s304_s15 + $0x48] sm:$0xff] %v338_v9  ;;  %v344_v12 = vld [vmem:[%s1638_s14 + $0xc0] sm:$0xff] }
  0x29   : > { %341 = vst [vmem:[%s304_s15 + $0x50] sm:$0xff] %v340_v10  ;;  %343 = vst [vmem:[%s304_s15 + $0x58] sm:$0xff] %v342_v11  ;;  %v346_v13 = vld [vmem:[%s1638_s14 + $0xc8] sm:$0xff]  ;;  %v348_v14 = vld [vmem:[%s1638_s14 + $0xd0] sm:$0xff] }
  0x2a   : > { %345 = vst [vmem:[%s304_s15 + $0x60] sm:$0xff] %v344_v12  ;;  %347 = vst [vmem:[%s304_s15 + $0x68] sm:$0xff] %v346_v13  ;;  %v350_v15 = vld [vmem:[%s1638_s14 + $0xd8] sm:$0xff] }
  0x2b   : > { %349 = vst [vmem:[%s304_s15 + $0x70] sm:$0xff] %v348_v14  ;;  %351 = vst [vmem:[%s304_s15 + $0x78] sm:$0xff] %v350_v15 }
  0x2c PF: > { %357 = sbr.rel (!%p1608_p4) target bundleno = 52 (0x34), region = 55  ;;  %s359_s20 = sand.u32 (%p1608_p4), 1, %s1518_s10  }
  0x2d   : > { %s1373_s21 = sshll.u32 (%p1608_p4), %s1522_s11, 5  ;;  %s1321_s22 = sshll.u32 (%p1608_p4), %s359_s20, 6 }
  0x2e   : > { %s364_s25 = scalar_lea.vmem (%p1608_p4), %s1886_s4, %s1373_s21  ;;  %s361_s26 = scalar_lea.vmem (%p1608_p4), [#allocation5], %s1321_s22 }
  0x2f   : > { %v377_v16 = vld [vmem:[%s364_s25] sm:$0xff] (%p1608_p4)  ;;  %v379_v17 = vld [vmem:[%s364_s25 + $0x8] sm:$0xff] (%p1608_p4)  ;;  %v381_v18 = vld [vmem:[%s364_s25 + $0x10] sm:$0xff] (%p1608_p4) }
  0x30   : > { %378 = vst [vmem:[%s361_s26] sm:$0xff] (%p1608_p4), %v377_v16  ;;  %380 = vst [vmem:[%s361_s26 + $0x8] sm:$0xff] (%p1608_p4), %v379_v17  ;;  %v383_v19 = vld [vmem:[%s364_s25 + $0x18] sm:$0xff] (%p1608_p4)  ;;  %v385_v20 = vld [vmem:[%s364_s25 + $0x40] sm:$0xff] (%p1608_p4) }
  0x31   : > { %382 = vst [vmem:[%s361_s26 + $0x10] sm:$0xff] %v381_v18  ;;  %v387_v21 = vld [vmem:[%s364_s25 + $0x48] sm:$0xff]  ;;  %384 = vst [vmem:[%s361_s26 + $0x18] sm:$0xff] %v383_v19  ;;  %v389_v22 = vld [vmem:[%s364_s25 + $0x50] sm:$0xff] }
  0x32   : > { %386 = vst [vmem:[%s361_s26 + $0x20] sm:$0xff] %v385_v20  ;;  %388 = vst [vmem:[%s361_s26 + $0x28] sm:$0xff] %v387_v21  ;;  %v391_v23 = vld [vmem:[%s364_s25 + $0x58] sm:$0xff] }
  0x33   : > { %390 = vst [vmem:[%s361_s26 + $0x30] sm:$0xff] %v389_v22  ;;  %392 = vst [vmem:[%s361_s26 + $0x38] sm:$0xff] %v391_v23 }
  0x34 PF: > { %398 = sbr.rel (!%p1608_p4) target bundleno = 60 (0x3c), region = 78  ;;  %s400_s27 = sand.u32 (%p1608_p4), 1, %s1518_s10  }
  0x35   : > { %s1374_s28 = sshll.u32 (%p1608_p4), %s1522_s11, 5  ;;  %s1324_s29 = sshll.u32 (%p1608_p4), %s400_s27, 6 }
  0x36   : > { %s405_s20 = scalar_lea.vmem (%p1608_p4), %s1887_s5, %s1374_s28  ;;  %s402_s21 = scalar_lea.vmem (%p1608_p4), [#allocation6], %s1324_s29 }
  0x37   : > { %v418_v24 = vld [vmem:[%s405_s20] sm:$0xff] (%p1608_p4)  ;;  %v420_v25 = vld [vmem:[%s405_s20 + $0x8] sm:$0xff] (%p1608_p4)  ;;  %v422_v26 = vld [vmem:[%s405_s20 + $0x10] sm:$0xff] (%p1608_p4) }
  0x38   : > { %419 = vst [vmem:[%s402_s21] sm:$0xff] (%p1608_p4), %v418_v24  ;;  %421 = vst [vmem:[%s402_s21 + $0x8] sm:$0xff] (%p1608_p4), %v420_v25  ;;  %v424_v27 = vld [vmem:[%s405_s20 + $0x18] sm:$0xff] (%p1608_p4)  ;;  %v426_v28 = vld [vmem:[%s405_s20 + $0x40] sm:$0xff] (%p1608_p4) }
  0x39   : > { %423 = vst [vmem:[%s402_s21 + $0x10] sm:$0xff] %v422_v26  ;;  %v428_v29 = vld [vmem:[%s405_s20 + $0x48] sm:$0xff]  ;;  %425 = vst [vmem:[%s402_s21 + $0x18] sm:$0xff] %v424_v27  ;;  %v430_v30 = vld [vmem:[%s405_s20 + $0x50] sm:$0xff] }
  0x3a   : > { %427 = vst [vmem:[%s402_s21 + $0x20] sm:$0xff] %v426_v28  ;;  %429 = vst [vmem:[%s402_s21 + $0x28] sm:$0xff] %v428_v29  ;;  %v432_v31 = vld [vmem:[%s405_s20 + $0x58] sm:$0xff] }
  0x3b   : > { %431 = vst [vmem:[%s402_s21 + $0x30] sm:$0xff] %v430_v30  ;;  %433 = vst [vmem:[%s402_s21 + $0x38] sm:$0xff] %v432_v31 }
  0x3c PF: > { %439 = sbr.rel (!%p1608_p4) target bundleno = 68 (0x44), region = 101  ;;  %s441_s22 = sand.u32 (%p1608_p4), 1, %s1518_s10  }
  0x3d   : > { %s1375_s23 = sshll.u32 (%p1608_p4), %s1522_s11, 5  ;;  %s1327_s24 = sshll.u32 (%p1608_p4), %s441_s22, 6 }
  0x3e   : > { %s446_s27 = scalar_lea.vmem (%p1608_p4), %s1888_s6, %s1375_s23  ;;  %s443_s28 = scalar_lea.vmem (%p1608_p4), [#allocation7], %s1327_s24 }
  0x3f   : > { %v459_v32 = vld [vmem:[%s446_s27] sm:$0xff] (%p1608_p4)  ;;  %v461_v33 = vld [vmem:[%s446_s27 + $0x8] sm:$0xff] (%p1608_p4)  ;;  %v463_v34 = vld [vmem:[%s446_s27 + $0x10] sm:$0xff] (%p1608_p4) }
  0x40   : > { %460 = vst [vmem:[%s443_s28] sm:$0xff] (%p1608_p4), %v459_v32  ;;  %462 = vst [vmem:[%s443_s28 + $0x8] sm:$0xff] (%p1608_p4), %v461_v33  ;;  %v465_v35 = vld [vmem:[%s446_s27 + $0x18] sm:$0xff] (%p1608_p4)  ;;  %v467_v36 = vld [vmem:[%s446_s27 + $0x40] sm:$0xff] (%p1608_p4) }
  0x41   : > { %464 = vst [vmem:[%s443_s28 + $0x10] sm:$0xff] %v463_v34  ;;  %v469_v37 = vld [vmem:[%s446_s27 + $0x48] sm:$0xff]  ;;  %466 = vst [vmem:[%s443_s28 + $0x18] sm:$0xff] %v465_v35  ;;  %v471_v38 = vld [vmem:[%s446_s27 + $0x50] sm:$0xff] }
  0x42   : > { %468 = vst [vmem:[%s443_s28 + $0x20] sm:$0xff] %v467_v36  ;;  %470 = vst [vmem:[%s443_s28 + $0x28] sm:$0xff] %v469_v37  ;;  %v473_v39 = vld [vmem:[%s446_s27 + $0x58] sm:$0xff] }
  0x43   : > { %472 = vst [vmem:[%s443_s28 + $0x30] sm:$0xff] %v471_v38  ;;  %474 = vst [vmem:[%s443_s28 + $0x38] sm:$0xff] %v473_v39 }
  0x44 PF: > { %483 = sbr.rel (%p1619_p9) target bundleno = 408 (0x198), region = 124 }
  0x49   : > { %1509 = dma.done.wait (%p1387_p8), [#allocation3], 16  }
  0x4a   : > { %1511 = vsyncadd (%p1387_p8), [#allocation3], 4294967280  ;;  %s490_s11 = sand.u32 1, %s1514_s30  }
  0x4b   : > { %s1332_s17 = sshll.u32 %s490_s11, 7  ;;  %s1684_s29 = sshll.u32 %s490_s11, 6 }
  0x4c   : > { %s1686_s14 = scalar_lea.vmem [#allocation4], %s1332_s17  ;;  %s1689_s15 = scalar_lea.vmem [#allocation5], %s1684_s29 }
  0x4d   : > { %s1692_s19 = scalar_lea.vmem [#allocation6], %s1684_s29  ;;  %s1695_s20 = scalar_lea.vmem [#allocation7], %s1684_s29 }
  0x4e   : > { %517 = sfence }
  0x4f   : > { %v591_v40 = vld [vmem:[%s1686_s14 + $0x68] sm:$0xff]  ;;  %v593_v41 = vld [vmem:[%s1686_s14 + $0x78] sm:$0xff]  ;;  %v590_v42 = vld [vmem:[%s1686_s14 + $0x60] sm:$0xff]  ;;  %vm606_vm0 = vcmask 261120   ;;  %v1525_v57 = vmov 0.0   ;;  %v1526_v60 = vmov 0  }
  0x50   : > { %637 = vmatprep.subr.mxu0 %v591_v40  ;;  %714 = vmatprep.subr.mxu1 %v593_v41  ;;  %v592_v43 = vld [vmem:[%s1686_s14 + $0x70] sm:$0xff]  ;;  %v587_v44 = vld [vmem:[%s1686_s14 + $0x48] sm:$0xff]  ;;  %v589_v45 = vld [vmem:[%s1686_s14 + $0x58] sm:$0xff]  ;;  %s1729_s28 = sld [smem:[#allocation2 + $0x2]]  ;;  %s1795_s30 = scalar_lea.vmem [#allocation9], %s1684_s29 }
  0x51   : > { %638 = vmatpush1.msra.mxu0 %v590_v42  ;;  %715 = vmatpush1.msra.mxu1 %v592_v43  ;;  %v586_v46 = vld [vmem:[%s1686_s14 + $0x40] sm:$0xff]  ;;  %v588_v47 = vld [vmem:[%s1686_s14 + $0x50] sm:$0xff]  ;;  %v583_v48 = vld [vmem:[%s1686_s14 + $0x28] sm:$0xff]  ;;  %s1339_s11 = sld [smem:[#allocation2 + $0x1]]  ;;  %s1799_s21 = scalar_lea.vmem [#allocation10], %s1684_s29 }
  0x52   : > { %639 = vmatprep.subr.mxu0 %v587_v44  ;;  %716 = vmatprep.subr.mxu1 %v589_v45  ;;  %v585_v49 = vld [vmem:[%s1686_s14 + $0x38] sm:$0xff]  ;;  %v582_v50 = vld [vmem:[%s1686_s14 + $0x20] sm:$0xff]  ;;  %v584_v51 = vld [vmem:[%s1686_s14 + $0x30] sm:$0xff]  ;;  %s573_s17 = sld [smem:[#allocation2]]  ;;  %p1895_p4 = scmp.ne.s32.totalorder %s1893_s18, 0 }
  0x53   : > { %640 = vmatpush1.msra.mxu0 %v586_v46  ;;  %717 = vmatpush1.msra.mxu1 %v588_v47  ;;  %v579_v52 = vld [vmem:[%s1686_s14 + $0x8] sm:$0xff]  ;;  %v581_v53 = vld [vmem:[%s1686_s14 + $0x18] sm:$0xff]  ;;  %v578_v54 = vld [vmem:[%s1686_s14] sm:$0xff] }
  0x54   : > { %641 = vmatprep.subr.mxu0 %v583_v48  ;;  %718 = vmatprep.subr.mxu1 %v585_v49  ;;  %v580_v55 = vld [vmem:[%s1686_s14 + $0x10] sm:$0xff]  ;;  %v576_v56 = vld [vmem:[%s1883_s1] sm:$0xff]  ;;  %v577_v59 = vld [vmem:[%s1883_s1 + $0x8] sm:$0xff] }
  0x55   : > { %642 = vmatpush1.msra.mxu0 %v582_v50  ;;  %719 = vmatpush1.msra.mxu1 %v584_v51  ;;  %v594_v58 = vld [vmem:[%s1884_s2] sm:$0xff]  ;;  %v595_v61 = vld [vmem:[%s1884_s2 + $0x8] sm:$0xff] }
  0x56   : > { %643 = vmatprep.subr.mxu0 %v579_v52  ;;  %720 = vmatprep.subr.mxu1 %v581_v53  ;;  %v1732_v47 = vstv %s1729_s28  ;;  %s841_s14 = ssub.f32 1.0, %s1729_s28 }
  0x57   : > { %644 = vmatpush1.msra.mxu0 %v578_v54  ;;  %677 = vmatprep.mubr.f32.mxu0 %v1525_v57  ;;  %v1735_v50 = vstv %s1339_s11 }
  0x58   : > { %721 = vmatpush1.msra.mxu1 %v580_v55  ;;  %754 = vmatprep.mubr.f32.mxu1 %v1525_v57  ;;  %v1738_v55 = vstv %s573_s17 }
  0x59   : > { %1341 = vmatmul.mubr.msk.f32.vlgmr.msra.gmra.mxu0 %vm606_vm0, %v576_v56  ;;  %1343 = vmatmul.mubr.msk.f32.vlgmr.msra.gmra.mxu1 %vm606_vm0, %v576_v56 }
  0x5a   : > { %683 = vmatprep.mubr.f32.mxu0 %v1525_v57  ;;  %760 = vmatprep.mubr.f32.mxu1 %v1525_v57 }
  0x5b   : > { %1416 = vset.pattern.permute.xlu0 %v1526_v60 }
  0x5c   : > { %598 = vperm.xlu0 %1416, %v594_v58  }
  0x5d   : > { %1342 = vmatmul.mubr.msk.f32.gmra.mxu0 %vm606_vm0, %v577_v59  ;;  %1344 = vmatmul.mubr.msk.f32.gmra.mxu1 %vm606_vm0, %v577_v59 }
  0x60   : > { %603 = vperm.xlu0 %1416, %v595_v61  }
  0xd7   : > { %v599_v62 = vpop.permute.xlu0 %598 }
  0xdb   : > { %v604_v13 = vpop.permute.xlu0 %603 }
 0x119   : > { %v679_v63 = vpop.f32.mrf.mxu0  ;;  %v756_v0 = vpop.f32.mrf.mxu1 }
 0x11a   : > { %v680_v1 = vadd.f32 %v679_v63, %v599_v62  ;;  %v757_v2 = vadd.f32 %v756_v0, %v599_v62 }
 0x11b   : > { %v681_v3 = vpop.f32.mrf.mxu0  ;;  %v758_v4 = vpop.f32.mrf.mxu1 }
 0x11c   : > { %v1345_v5 = vmul.f32 -5.0, %v680_v1  ;;  %v1347_v6 = vmul.f32 -5.0, %v757_v2  ;;  %v682_v7 = vadd.f32 %v681_v3, %v599_v62  ;;  %v759_v8 = vadd.f32 %v758_v4, %v599_v62 }
 0x11d   : > { %v685_v9 = vpop.f32.mrf.mxu0  ;;  %v762_v10 = vpop.f32.mrf.mxu1  ;;  %v1743_v62 = vstv %s841_s14 }
 0x11e   : > { %v783_v11 = vmul.f32 1.442695, %v1345_v5  ;;  %v787_v12 = vmul.f32 1.442695, %v1347_v6  ;;  %v1346_v14 = vmul.f32 -5.0, %v682_v7  ;;  %v1348_v15 = vmul.f32 -5.0, %v759_v8 }
 0x11f   : > { %v686_v16 = vadd.f32 %v685_v9, %v604_v13  ;;  %v763_v17 = vadd.f32 %v762_v10, %v604_v13  ;;  %v687_v18 = vpop.f32.mrf.mxu0  ;;  %v764_v19 = vpop.f32.mrf.mxu1 }
 0x120   : > { %1417 = vpow2.f32 %v783_v11  ;;  %v785_v20 = vmul.f32 1.442695, %v1346_v14  ;;  %v789_v21 = vmul.f32 1.442695, %v1348_v15  ;;  %v688_v22 = vadd.f32 %v687_v18, %v604_v13 }
 0x121   : > { %1419 = vpow2.f32 %v787_v12  ;;  %v1349_v23 = vmul.f32 -5.0, %v686_v16  ;;  %v1351_v24 = vmul.f32 -5.0, %v763_v17  ;;  %v765_v25 = vadd.f32 %v764_v19, %v604_v13  ;;  %v884_v16 = vld [vmem:[%s1689_s15] sm:$0xff] }
 0x122   : > { %1421 = vpow2.f32 %v785_v20  ;;  %v1350_v26 = vmul.f32 -5.0, %v688_v22  ;;  %v886_v22 = vld [vmem:[%s1689_s15 + $0x10] sm:$0xff] }
 0x123   : > { %1423 = vpow2.f32 %v789_v21  ;;  %v791_v27 = vmul.f32 1.442695, %v1349_v23  ;;  %v795_v28 = vmul.f32 1.442695, %v1351_v24  ;;  %v1352_v29 = vmul.f32 -5.0, %v765_v25 }
 0x124   : > { %v793_v30 = vmul.f32 1.442695, %v1350_v26 }
 0x125   : > { %1425 = vpow2.f32 %v791_v27  ;;  %v797_v31 = vmul.f32 1.442695, %v1352_v29  ;;  %v885_v27 = vld [vmem:[%s1689_s15 + $0x8] sm:$0xff] }
 0x126   : > { %1427 = vpow2.f32 %v795_v28 }
 0x127   : > { %1429 = vpow2.f32 %v793_v30 }
 0x128   : > { %1431 = vpow2.f32 %v797_v31 }
 0x12d   : > { %v1418_v32 = vpop.eup %1417 }
 0x12e   : > { %v1420_v33 = vpop.eup %1419  ;;  %v799_v34 = vadd.f32 1.0, %v1418_v32 }
 0x12f   : > { %v1422_v35 = vpop.eup %1421  ;;  %v801_v36 = vadd.f32 1.0, %v1420_v33  ;;  %v887_v33 = vld [vmem:[%s1689_s15 + $0x18] sm:$0xff] }
 0x130   : > { %v1424_v37 = vpop.eup %1423  ;;  %1433 = vrcp.f32 %v799_v34  ;;  %v800_v38 = vadd.f32 1.0, %v1422_v35 }
 0x131   : > { %1435 = vrcp.f32 %v801_v36  ;;  %v802_v39 = vadd.f32 1.0, %v1424_v37 }
 0x132   : > { %v1426_v40 = vpop.eup %1425  ;;  %1437 = vrcp.f32 %v800_v38 }
 0x133   : > { %v1428_v41 = vpop.eup %1427  ;;  %1439 = vrcp.f32 %v802_v39  ;;  %v803_v42 = vadd.f32 1.0, %v1426_v40 }
 0x134   : > { %v1430_v43 = vpop.eup %1429  ;;  %v805_v44 = vadd.f32 1.0, %v1428_v41 }
 0x135   : > { %1441 = vrcp.f32 %v803_v42  ;;  %v804_v45 = vadd.f32 1.0, %v1430_v43  ;;  %v1432_v46 = vpop.eup %1431 }
 0x136   : > { %1443 = vrcp.f32 %v805_v44  ;;  %v806_v48 = vadd.f32 1.0, %v1432_v46  ;;  %v888_v46 = vld [vmem:[%s1689_s15 + $0x20] sm:$0xff] }
 0x137   : > { %1445 = vrcp.f32 %v804_v45 }
 0x138   : > { %1447 = vrcp.f32 %v806_v48 }
 0x13d   : > { %v1434_v49 = vpop.eup %1433 }
 0x13e   : > { %v1436_v51 = vpop.eup %1435  ;;  %v824_v52 = vmul.f32 %v1434_v49, %v1732_v47  ;;  %v842_v53 = vsub.f32 1.0, %v1434_v49 }
 0x13f   : > { %v1438_v54 = vpop.eup %1437  ;;  %v826_v56 = vmul.f32 %v1436_v51, %v1732_v47  ;;  %v844_v57 = vsub.f32 1.0, %v1436_v51 }
 0x140   : > { %v1440_v58 = vpop.eup %1439  ;;  %v851_v59 = vmul.f32 %v1735_v50, %v842_v53  ;;  %v825_v60 = vmul.f32 %v1438_v54, %v1732_v47  ;;  %v843_v61 = vsub.f32 1.0, %v1438_v54  ;;  %v833_v3 = vmul.f32 %v1738_v55, %v824_v52 }
 0x141   : > { %v853_v63 = vmul.f32 %v1735_v50, %v844_v57  ;;  %v827_v0 = vmul.f32 %v1440_v58, %v1732_v47  ;;  %v845_v1 = vsub.f32 1.0, %v1440_v58  ;;  %v835_v7 = vmul.f32 %v1738_v55, %v826_v56  ;;  %v890_v56 = vld [vmem:[%s1689_s15 + $0x30] sm:$0xff] }
 0x142   : > { %v1442_v2 = vpop.eup %1441  ;;  %v859_v4 = vsub.f32 1.0, %v851_v59  ;;  %v852_v5 = vmul.f32 %v1735_v50, %v843_v61  ;;  %v834_v12 = vmul.f32 %v1738_v55, %v825_v60 }
 0x143   : > { %v1444_v6 = vpop.eup %1443  ;;  %v861_v8 = vsub.f32 1.0, %v853_v63  ;;  %v854_v9 = vmul.f32 %v1735_v50, %v845_v1  ;;  %v828_v10 = vmul.f32 %v1442_v2, %v1732_v47  ;;  %v846_v14 = vsub.f32 1.0, %v1442_v2 }
 0x144   : > { %v868_v11 = vmul.f32 %v1743_v62, %v859_v4  ;;  %v860_v13 = vsub.f32 1.0, %v852_v5  ;;  %v1446_v15 = vpop.eup %1445  ;;  %v836_v18 = vmul.f32 %v1738_v55, %v827_v0  ;;  %v848_v20 = vsub.f32 1.0, %v1444_v6  ;;  %v889_v4 = vld [vmem:[%s1689_s15 + $0x28] sm:$0xff] }
 0x145   : > { %v870_v17 = vmul.f32 %v1743_v62, %v861_v8  ;;  %v862_v19 = vsub.f32 1.0, %v854_v9  ;;  %v855_v24 = vmul.f32 %v1735_v50, %v846_v14  ;;  %v830_v25 = vmul.f32 %v1444_v6, %v1732_v47  ;;  %v1448_v51 = vpop.eup %1447 }
 0x146   : > { %v876_v21 = vadd.f32 %v868_v11, %v833_v3  ;;  %v869_v23 = vmul.f32 %v1743_v62, %v860_v13  ;;  %v837_v29 = vmul.f32 %v1738_v55, %v828_v10  ;;  %v857_v30 = vmul.f32 %v1735_v50, %v848_v20 }
 0x147   : > { %v878_v26 = vadd.f32 %v870_v17, %v835_v7  ;;  %v871_v28 = vmul.f32 %v1743_v62, %v862_v19  ;;  %v863_v34 = vsub.f32 1.0, %v855_v24  ;;  %v847_v35 = vsub.f32 1.0, %v1446_v15  ;;  %v891_v19 = vld [vmem:[%s1689_s15 + $0x38] sm:$0xff]  ;;  %s1788_s15 = scalar_lea.vmem [#allocation8], %s1684_s29  ;;  %s1376_s29 = sshll.u32 (%p1895_p4), %s1593_s12, 5 }
 0x148   : > { %v892_v31 = vsub.f32 %v876_v21, %v884_v16  ;;  %v877_v32 = vadd.f32 %v869_v23, %v834_v12  ;;  %v865_v38 = vsub.f32 1.0, %v857_v30  ;;  %v829_v39 = vmul.f32 %v1446_v15, %v1732_v47  ;;  %s1029_s22 = scalar_lea.vmem (%p1895_p4), %s1889_s7, %s1376_s29 }
 0x149   : > { %v894_v36 = vsub.f32 %v878_v26, %v886_v22  ;;  %v879_v37 = vadd.f32 %v871_v28, %v836_v18  ;;  %v872_v42 = vmul.f32 %v1743_v62, %v863_v34  ;;  %v856_v43 = vmul.f32 %v1735_v50, %v847_v35  ;;  %v964_v34 = vld [vmem:[%s1692_s19] sm:$0xff] }
 0x14a   : > { %v1353_v40 = vmul.f32 -12.0, %v892_v31  ;;  %v893_v41 = vsub.f32 %v877_v32, %v885_v27  ;;  %v839_v48 = vmul.f32 %v1738_v55, %v830_v25  ;;  %v874_v49 = vmul.f32 %v1743_v62, %v865_v38  ;;  %v988_v35 = vld [vmem:[%s1695_s20] sm:$0xff] }
 0x14b   : > { %v1355_v44 = vmul.f32 -12.0, %v894_v36  ;;  %v895_v45 = vsub.f32 %v879_v37, %v887_v33  ;;  %v880_v54 = vadd.f32 %v872_v42, %v837_v29  ;;  %v864_v57 = vsub.f32 1.0, %v856_v43  ;;  %v966_v36 = vld [vmem:[%s1692_s19 + $0x10] sm:$0xff] }
 0x14c   : > { %v916_v52 = vmul.f32 1.442695, %v1353_v40  ;;  %v1354_v53 = vmul.f32 -12.0, %v893_v41  ;;  %v882_v60 = vadd.f32 %v874_v49, %v839_v48  ;;  %v838_v61 = vmul.f32 %v1738_v55, %v829_v39  ;;  %v990_v37 = vld [vmem:[%s1695_s20 + $0x10] sm:$0xff]  ;;  %v965_v39 = vld [vmem:[%s1692_s19 + $0x8] sm:$0xff] }
 0x14d   : > { %v920_v58 = vmul.f32 1.442695, %v1355_v44  ;;  %v1356_v59 = vmul.f32 -12.0, %v895_v45  ;;  %v896_v0 = vsub.f32 %v880_v54, %v888_v46  ;;  %v873_v1 = vmul.f32 %v1743_v62, %v864_v57  ;;  %v989_v40 = vld [vmem:[%s1695_s20 + $0x8] sm:$0xff]  ;;  %v967_v44 = vld [vmem:[%s1692_s19 + $0x18] sm:$0xff] }
 0x14e   : > { %1449 = vpow2.f32 %v916_v52  ;;  %v918_v63 = vmul.f32 1.442695, %v1354_v53  ;;  %v898_v3 = vsub.f32 %v882_v60, %v890_v56  ;;  %v849_v5 = vsub.f32 1.0, %v1448_v51  ;;  %v991_v45 = vld [vmem:[%s1695_s20 + $0x18] sm:$0xff]  ;;  %v970_v60 = vld [vmem:[%s1692_s19 + $0x30] sm:$0xff] }
 0x14f   : > { %1451 = vpow2.f32 %v920_v58  ;;  %v922_v2 = vmul.f32 1.442695, %v1356_v59  ;;  %v1357_v6 = vmul.f32 -12.0, %v896_v0  ;;  %v881_v7 = vadd.f32 %v873_v1, %v838_v61  ;;  %v968_v58 = vld [vmem:[%s1692_s19 + $0x20] sm:$0xff]  ;;  %v994_v61 = vld [vmem:[%s1695_s20 + $0x30] sm:$0xff] }
 0x150   : > { %1453 = vpow2.f32 %v918_v63  ;;  %v1359_v8 = vmul.f32 -12.0, %v898_v3  ;;  %v831_v9 = vmul.f32 %v1448_v51, %v1732_v47  ;;  %v858_v10 = vmul.f32 %v1735_v50, %v849_v5  ;;  %v992_v59 = vld [vmem:[%s1695_s20 + $0x20] sm:$0xff] }
 0x151   : > { %1455 = vpow2.f32 %v922_v2  ;;  %v924_v11 = vmul.f32 1.442695, %v1357_v6  ;;  %v897_v12 = vsub.f32 %v881_v7, %v889_v4  ;;  %v969_v6 = vld [vmem:[%s1692_s19 + $0x28] sm:$0xff] }
 0x152   : > { %v928_v13 = vmul.f32 1.442695, %v1359_v8  ;;  %v866_v14 = vsub.f32 1.0, %v858_v10  ;;  %v840_v16 = vmul.f32 %v1738_v55, %v831_v9  ;;  %v993_v7 = vld [vmem:[%s1695_s20 + $0x28] sm:$0xff] }
 0x153   : > { %1457 = vpow2.f32 %v924_v11  ;;  %v1358_v15 = vmul.f32 -12.0, %v897_v12  ;;  %v971_v11 = vld [vmem:[%s1692_s19 + $0x38] sm:$0xff] }
 0x154   : > { %1459 = vpow2.f32 %v928_v13  ;;  %v875_v17 = vmul.f32 %v1743_v62, %v866_v14  ;;  %v995_v12 = vld [vmem:[%s1695_s20 + $0x38] sm:$0xff] }
 0x155   : > { %v926_v18 = vmul.f32 1.442695, %v1358_v15 }
 0x156   : > { %v883_v20 = vadd.f32 %v875_v17, %v840_v16 }
 0x157   : > { %1461 = vpow2.f32 %v926_v18 }
 0x158   : > { %v899_v21 = vsub.f32 %v883_v20, %v891_v19 }
 0x15a   : > { %v1360_v47 = vmul.f32 -12.0, %v899_v21 }
 0x15b   : > { %v1450_v22 = vpop.eup %1449 }
 0x15c   : > { %v1452_v23 = vpop.eup %1451  ;;  %v932_v50 = vadd.f32 1.0, %v1450_v22  ;;  %v930_v28 = vmul.f32 1.442695, %v1360_v47 }
 0x15d   : > { %v1454_v24 = vpop.eup %1453  ;;  %v934_v25 = vadd.f32 1.0, %v1452_v23 }
 0x15e   : > { %v1456_v26 = vpop.eup %1455  ;;  %1463 = vrcp.f32 %v932_v50  ;;  %v933_v27 = vadd.f32 1.0, %v1454_v24 }
 0x15f   : > { %1465 = vrcp.f32 %v934_v25  ;;  %v935_v55 = vadd.f32 1.0, %v1456_v26 }
 0x160   : > { %1467 = vrcp.f32 %v933_v27  ;;  %v1458_v62 = vpop.eup %1457 }
 0x161   : > { %1469 = vrcp.f32 %v935_v55  ;;  %v1460_v29 = vpop.eup %1459  ;;  %v936_v30 = vadd.f32 1.0, %v1458_v62 }
 0x162   : > { %1471 = vpow2.f32 %v930_v28  ;;  %v938_v31 = vadd.f32 1.0, %v1460_v29 }
 0x163   : > { %1473 = vrcp.f32 %v936_v30 }
 0x164   : > { %v1462_v32 = vpop.eup %1461  ;;  %1475 = vrcp.f32 %v938_v31 }
 0x165   : > { %v937_v33 = vadd.f32 1.0, %v1462_v32 }
 0x167   : > { %1477 = vrcp.f32 %v937_v33 }
 0x16b   : > { %v1464_v38 = vpop.eup %1463 }
 0x16c   : > { %v1466_v41 = vpop.eup %1465  ;;  %956 = vst [vmem:[%s1788_s15] sm:$0xff] %v1464_v38  ;;  %v972_v42 = vmul.f32 %v1464_v38, %v964_v34  ;;  %v996_v43 = vmul.f32 %v1464_v38, %v988_v35 }
 0x16d   : > { %v1468_v46 = vpop.eup %1467  ;;  %958 = vst [vmem:[%s1788_s15 + $0x10] sm:$0xff] %v1466_v41  ;;  %v974_v48 = vmul.f32 %v1466_v41, %v966_v36  ;;  %v998_v49 = vmul.f32 %v1466_v41, %v990_v37 }
 0x16e   : > { %v1470_v51 = vpop.eup %1469  ;;  %980 = vst [vmem:[%s1795_s30] sm:$0xff] %v972_v42  ;;  %1004 = vst [vmem:[%s1799_s21] sm:$0xff] %v996_v43  ;;  %v973_v52 = vmul.f32 %v1468_v46, %v965_v39  ;;  %v997_v53 = vmul.f32 %v1468_v46, %v989_v40 }
 0x16f   : > { %957 = vst [vmem:[%s1788_s15 + $0x8] sm:$0xff] %v1468_v46  ;;  %v1472_v54 = vpop.eup %1471  ;;  %982 = vst [vmem:[%s1795_s30 + $0x10] sm:$0xff] %v974_v48  ;;  %v975_v56 = vmul.f32 %v1470_v51, %v967_v44  ;;  %v999_v57 = vmul.f32 %v1470_v51, %v991_v45 }
 0x170   : > { %1006 = vst [vmem:[%s1799_s21 + $0x10] sm:$0xff] %v998_v49  ;;  %959 = vst [vmem:[%s1788_s15 + $0x18] sm:$0xff] %v1470_v51  ;;  %v939_v63 = vadd.f32 1.0, %v1472_v54  ;;  %v1474_v0 = vpop.eup %1473 }
 0x171   : > { %981 = vst [vmem:[%s1795_s30 + $0x8] sm:$0xff] %v973_v52  ;;  %1005 = vst [vmem:[%s1799_s21 + $0x8] sm:$0xff] %v997_v53  ;;  %v1476_v1 = vpop.eup %1475  ;;  %v976_v2 = vmul.f32 %v1474_v0, %v968_v58  ;;  %v1000_v3 = vmul.f32 %v1474_v0, %v992_v59 }
 0x172   : > { %983 = vst [vmem:[%s1795_s30 + $0x18] sm:$0xff] %v975_v56  ;;  %1007 = vst [vmem:[%s1799_s21 + $0x18] sm:$0xff] %v999_v57  ;;  %1479 = vrcp.f32 %v939_v63  ;;  %v978_v4 = vmul.f32 %v1476_v1, %v970_v60  ;;  %v1002_v5 = vmul.f32 %v1476_v1, %v994_v61 }
 0x173   : > { %960 = vst [vmem:[%s1788_s15 + $0x20] sm:$0xff] %v1474_v0  ;;  %962 = vst [vmem:[%s1788_s15 + $0x30] sm:$0xff] %v1476_v1  ;;  %v1042_v16 = vld [vmem:[%s1788_s15] sm:$0xff] (%p1895_p4) }
 0x174   : > { %984 = vst [vmem:[%s1795_s30 + $0x20] sm:$0xff] %v976_v2  ;;  %1008 = vst [vmem:[%s1799_s21 + $0x20] sm:$0xff] %v1000_v3  ;;  %v1478_v8 = vpop.eup %1477  ;;  %v1046_v18 = vld [vmem:[%s1788_s15 + $0x10] sm:$0xff] (%p1895_p4) }
 0x175   : > { %986 = vst [vmem:[%s1795_s30 + $0x30] sm:$0xff] %v978_v4  ;;  %1010 = vst [vmem:[%s1799_s21 + $0x30] sm:$0xff] %v1002_v5  ;;  %v977_v9 = vmul.f32 %v1478_v8, %v969_v6  ;;  %v1001_v10 = vmul.f32 %v1478_v8, %v993_v7 }
 0x176   : > { %961 = vst [vmem:[%s1788_s15 + $0x28] sm:$0xff] %v1478_v8  ;;  %v1044_v17 = vld [vmem:[%s1788_s15 + $0x8] sm:$0xff] (%p1895_p4)  ;;  %1043 = vst [vmem:[%s1029_s22] sm:$0xff] (%p1895_p4), %v1042_v16 }
 0x177   : > { %985 = vst [vmem:[%s1795_s30 + $0x28] sm:$0xff] %v977_v9  ;;  %1009 = vst [vmem:[%s1799_s21 + $0x28] sm:$0xff] %v1001_v10  ;;  %v1048_v19 = vld [vmem:[%s1788_s15 + $0x18] sm:$0xff] (%p1895_p4) }
 0x178   : > { %1045 = vst [vmem:[%s1029_s22 + $0x8] sm:$0xff] (%p1895_p4), %v1044_v17  ;;  %1047 = vst [vmem:[%s1029_s22 + $0x10] sm:$0xff] (%p1895_p4), %v1046_v18 }
 0x179   : > { %1049 = vst [vmem:[%s1029_s22 + $0x18] sm:$0xff] (%p1895_p4), %v1048_v19 }
 0x17a   : > { %v1050_v20 = vld [vmem:[%s1788_s15 + $0x20] sm:$0xff] (%p1895_p4)  ;;  %v1054_v22 = vld [vmem:[%s1788_s15 + $0x30] sm:$0xff] (%p1895_p4) }
 0x17b   : > { %1051 = vst [vmem:[%s1029_s22 + $0x40] sm:$0xff] (%p1895_p4), %v1050_v20  ;;  %1055 = vst [vmem:[%s1029_s22 + $0x50] sm:$0xff] (%p1895_p4), %v1054_v22 }
 0x17d   : > { %v1052_v21 = vld [vmem:[%s1788_s15 + $0x28] sm:$0xff] (%p1895_p4) }
 0x17e   : > { %1026 = sbr.rel (!%p1895_p4) target bundleno = 393 (0x189), region = 148  ;;  %1053 = vst [vmem:[%s1029_s22 + $0x48] sm:$0xff] (%p1895_p4), %v1052_v21 }
 0x17f   : > { %v1480_v13 = vpop.eup %1479 }
 0x180   : > { %963 = vst [vmem:[%s1788_s15 + $0x38] sm:$0xff] %v1480_v13  ;;  %v979_v14 = vmul.f32 %v1480_v13, %v971_v11  ;;  %v1003_v15 = vmul.f32 %v1480_v13, %v995_v12 }
 0x182   : > { %987 = vst [vmem:[%s1795_s30 + $0x38] sm:$0xff] %v979_v14  ;;  %1011 = vst [vmem:[%s1799_s21 + $0x38] sm:$0xff] %v1003_v15 }
 0x187   : > { %v1056_v47 = vld [vmem:[%s1788_s15 + $0x38] sm:$0xff] }
 0x188   : > { %1057 = vst [vmem:[%s1029_s22 + $0x58] sm:$0xff] %v1056_v47 }
 0x189 PF: > { %p1896_p5 = scmp.ne.s32.totalorder %s1893_s18, 0 }
 0x18a   : > { %s1377_s23 = sshll.u32 (%p1896_p5), %s1593_s12, 5  ;;  %v1079_v23 = vld [vmem:[%s1795_s30] sm:$0xff] (%p1896_p5)  ;;  %v1081_v50 = vld [vmem:[%s1795_s30 + $0x8] sm:$0xff] (%p1896_p5)  ;;  %v1083_v24 = vld [vmem:[%s1795_s30 + $0x10] sm:$0xff] (%p1896_p5) }
 0x18b   : > { %1063 = sbr.rel (!%p1896_p5) target bundleno = 401 (0x191), region = 171  ;;  %s1066_s26 = scalar_lea.vmem (%p1896_p5), %s1890_s8, %s1377_s23  ;;  %v1085_v25 = vld [vmem:[%s1795_s30 + $0x18] sm:$0xff] (%p1896_p5)  ;;  %v1087_v26 = vld [vmem:[%s1795_s30 + $0x20] sm:$0xff] (%p1896_p5)  ;;  %v1089_v27 = vld [vmem:[%s1795_s30 + $0x28] sm:$0xff] (%p1896_p5) }
 0x18c   : > { %1080 = vst [vmem:[%s1066_s26] sm:$0xff] (%p1896_p5), %v1079_v23  ;;  %1082 = vst [vmem:[%s1066_s26 + $0x8] sm:$0xff] (%p1896_p5), %v1081_v50  ;;  %v1091_v28 = vld [vmem:[%s1795_s30 + $0x30] sm:$0xff] (%p1896_p5) }
 0x18d   : > { %1084 = vst [vmem:[%s1066_s26 + $0x10] sm:$0xff] (%p1896_p5), %v1083_v24  ;;  %1086 = vst [vmem:[%s1066_s26 + $0x18] sm:$0xff] (%p1896_p5), %v1085_v25 }
 0x18e   : > { %1088 = vst [vmem:[%s1066_s26 + $0x40] sm:$0xff] (%p1896_p5), %v1087_v26  ;;  %1090 = vst [vmem:[%s1066_s26 + $0x48] sm:$0xff] (%p1896_p5), %v1089_v27 }
 0x18f   : > { %v1093_v55 = vld [vmem:[%s1795_s30 + $0x38] sm:$0xff] (%p1896_p5)  ;;  %1092 = vst [vmem:[%s1066_s26 + $0x50] sm:$0xff] (%p1896_p5), %v1091_v28 }
 0x190   : > { %1094 = vst [vmem:[%s1066_s26 + $0x58] sm:$0xff] %v1093_v55 }
 0x191 PF: > { %p1897_p8 = scmp.ne.s32.totalorder %s1893_s18, 0 }
 0x192   : > { %s1378_s27 = sshll.u32 (%p1897_p8), %s1593_s12, 5  ;;  %v1116_v62 = vld [vmem:[%s1799_s21] sm:$0xff] (%p1897_p8)  ;;  %v1118_v29 = vld [vmem:[%s1799_s21 + $0x8] sm:$0xff] (%p1897_p8)  ;;  %v1120_v30 = vld [vmem:[%s1799_s21 + $0x10] sm:$0xff] (%p1897_p8) }
 0x193   : > { %1100 = sbr.rel (!%p1897_p8) target bundleno = 408 (0x198), region = 194  ;;  %s1103_s17 = scalar_lea.vmem (%p1897_p8), %s1891_s9, %s1378_s27  ;;  %v1122_v31 = vld [vmem:[%s1799_s21 + $0x18] sm:$0xff] (%p1897_p8)  ;;  %v1124_v32 = vld [vmem:[%s1799_s21 + $0x20] sm:$0xff] (%p1897_p8)  ;;  %v1126_v33 = vld [vmem:[%s1799_s21 + $0x28] sm:$0xff] (%p1897_p8) }
 0x194   : > { %1117 = vst [vmem:[%s1103_s17] sm:$0xff] (%p1897_p8), %v1116_v62  ;;  %1119 = vst [vmem:[%s1103_s17 + $0x8] sm:$0xff] (%p1897_p8), %v1118_v29  ;;  %v1128_v34 = vld [vmem:[%s1799_s21 + $0x30] sm:$0xff] (%p1897_p8)  ;;  %v1130_v35 = vld [vmem:[%s1799_s21 + $0x38] sm:$0xff] (%p1897_p8) }
 0x195   : > { %1121 = vst [vmem:[%s1103_s17 + $0x10] sm:$0xff] (%p1897_p8), %v1120_v30  ;;  %1123 = vst [vmem:[%s1103_s17 + $0x18] sm:$0xff] (%p1897_p8), %v1122_v31 }
 0x196   : > { %1125 = vst [vmem:[%s1103_s17 + $0x40] sm:$0xff] (%p1897_p8), %v1124_v32  ;;  %1127 = vst [vmem:[%s1103_s17 + $0x48] sm:$0xff] (%p1897_p8), %v1126_v33 }
 0x197   : > { %1129 = vst [vmem:[%s1103_s17 + $0x50] sm:$0xff] (%p1897_p8), %v1128_v34  ;;  %1131 = vst [vmem:[%s1103_s17 + $0x58] sm:$0xff] (%p1897_p8), %v1130_v35 }
 0x198 PF: > { %p18_p9 = scmp.ge.s32.totalorder %s1596_s13, 4   ;;  %s1898_s30 = smov %s1518_s10 }
 0x199   : > { %s1899_s10 = smov %s1606_s16  ;;  %s1900_s11 = smov %s1596_s13 }
 0x19a   :  { %20 = sbr.rel (!%p18_p9) target bundleno = 2 (0x2), region = 297 }
 0x19f   :  { %1161 = vsyncpa [#allocation3], 1 }
 0x1a0   :  { %1163 = vsyncpa [#allocation3 + $0x1], 1 }

// kernel: custom-call
= control target key start
LH: loop header
LB: loop body
LE: loop exit
PB: predicated region body
PF: predicated region fallthrough
CT: control target
= control target key end

     0   :  { %s92_s0 = inlined_call_operand.vmem [shape: f32[16,4,16,16], index: 0, kind: input, shape index: {}]   ;;  %s93_s1 = inlined_call_operand.vmem [shape: f32[16,4,16,16], index: 1, kind: input, shape index: {}]   ;;  %s94_s2 = inlined_call_operand.hbm [shape: c64[16,4,16,16], index: 2, kind: output, shape index: {}]  }
   0x1   :  { %s3_s11 = scalar_lea.hbm %s94_s2, 16384 }
   0x2   :  { %4 = vsyncpa [#allocation0], 0  ;;  %s5_s14 = sshll.u32 %s92_s0, 4  ;;  %s6_s14 = int_to_ptr.vmem [resolvable:$true] %s5_s14 }
   0x3   :  { %s18_s15 = scalar_lea.vmem %s6_s14, 16384  ;;  %p23_p1 = scmp.lt.s32.totalorder %s6_s14, %s6_s14 }
   0x4   :  { %p19_p0 = scmp.ne.s32.totalorder %s6_s14, %s18_s15  ;;  %p24_p2 = scmp.lt.s32.totalorder %s18_s15, %s18_s15 }
   0x6   :  { %p25_p3 = por %p24_p2, %p23_p1 }
   0x8   :  { %p26_p4 = pnand %p25_p3, %p19_p0 }
   0xa   :  { %29 = shalt.err (!%p26_p4)  }
   0xb   :  { %8 = dma.vmem_to_hbm [thread:$0]  %s6_s14, 16384, %s94_s2, [#allocation0] }
   0xc   :  { %61 = dma.done.wait [#allocation0], 16384  }
   0xd   :  { %62 = vsyncadd [#allocation0], 4294950912 }
   0xe   :  { %10 = vsyncpa [#allocation0], 1 }
   0xf   :  { %11 = vsyncpa [#allocation1], 0  ;;  %s12_s0 = sshll.u32 %s93_s1, 4  ;;  %s13_s0 = int_to_ptr.vmem [resolvable:$true] %s12_s0 }
  0x10   :  { %s38_s20 = scalar_lea.vmem %s13_s0, 16384  ;;  %p43_p6 = scmp.lt.s32.totalorder %s13_s0, %s13_s0 }
  0x11   :  { %p39_p5 = scmp.ne.s32.totalorder %s13_s0, %s38_s20  ;;  %p44_p7 = scmp.lt.s32.totalorder %s38_s20, %s38_s20 }
  0x13   :  { %p45_p8 = por %p44_p7, %p43_p6 }
  0x15   :  { %p46_p9 = pnand %p45_p8, %p39_p5 }
  0x17   :  { %49 = shalt.err (!%p46_p9)  }
  0x18   :  { %15 = dma.vmem_to_hbm [thread:$0]  %s13_s0, 16384, %s3_s11, [#allocation1] }
  0x19   :  { %63 = dma.done.wait [#allocation1], 16384  }
  0x1a   :  { %64 = vsyncadd [#allocation1], 4294950912 }
  0x1b   :  { %17 = vsyncpa [#allocation1], 1 }

// kernel: memc_loupe_forward.5
= control target key start
LH: loop header
LB: loop body
LE: loop exit
PB: predicated region body
PF: predicated region fallthrough
CT: control target
= control target key end

     0   :  { %s1428_s15 = smov 0   ;;  %s1430_s16 = smov 0   ;;  %s2088_s0 = inlined_call_operand.vmem [shape: f32[16,4,256], index: 0, kind: input, shape index: {}]   ;;  %s2089_s1 = inlined_call_operand.vmem [shape: f32[16,4,256], index: 1, kind: input, shape index: {}]   ;;  %s2090_s2 = inlined_call_operand.vmem [shape: f32[16,256], index: 2, kind: output, shape index: {0}]   ;;  %s2091_s3 = inlined_call_operand.vmem [shape: f32[16,4,256], index: 3, kind: output, shape index: {1}]   ;;  %s2092_s4 = inlined_call_operand.vmem [shape: f32[16,4,256], index: 4, kind: output, shape index: {2}]  }
   0x1   :  { %s1432_s17 = smov 0  }
   0x2 LB: > { %s1444_s18 = sadd.s32 4294967295, %s1401_s17   ;;  %s1447_s19 = sadd.s32 1, %s1401_s17   ;;  %s1401_s17 = sphi %s1432_s17, %s2133_s17   ;;  %s1397_s16 = sphi %s1430_s16, %s2132_s16   ;;  %s1393_s15 = sphi %s1428_s15, %s2131_s15  }
   0x3   : > { %s19_s20 = ssub.s32 %s1401_s17, %s1447_s19  ;;  %s22_s21 = sadd.s32 1, %s1397_s16 }
   0x4   : > { %p20_p0 = scmp.eq.s32.totalorder %s19_s20, 0  ;;  %p29_p1 = scmp.ne.s32.totalorder %s1397_s16, %s1393_s15 }
   0x5   : > { %p30_p2 = scmp.eq.s32.totalorder %s1401_s17, 0  ;;  %p85_p3 = scmp.eq.s32.totalorder %s1444_s18, 1 }
   0x6   : > { %s1457_s22 = scalar_select %p20_p0, %s1397_s16, %s22_s21  }
   0x7   : > { %p1459_p4 = por %p30_p2, %p29_p1  ;;  %p1463_p5 = por %p85_p3, %p29_p1 }
   0x8   : > { %p1272_p6 = scmp.ge.s32.totalorder %s1401_s17, 2 }
   0xa   : > { %159 = sbr.rel (%p1272_p6) target bundleno = 43 (0x2b), region = 16 }
   0xf   : > { %162 = sbr.rel (!%p1459_p4) target bundleno = 29 (0x1d), region = 20  ;;  %s164_s25 = sand.u32 (%p1459_p4), 1, %s1397_s16  }
  0x10   : > { %s1274_s26 = sshll.u32 (%p1459_p4), %s1401_s17, 2  ;;  %s1273_s27 = sshll.u32 (%p1459_p4), %s164_s25, 6 }
  0x11   : > { %s1475_s30 = scalar_lea.vmem (%p1459_p4), %s2088_s0, %s1274_s26  ;;  %s166_s5 = scalar_lea.vmem (%p1459_p4), [#allocation2], %s1273_s27 }
  0x12   : > { %v185_v0 = vld [vmem:[%s1475_s30] sm:$0xf] (%p1459_p4)  ;;  %v187_v1 = vld [vmem:[%s1475_s30 + $0x8] sm:$0xf] (%p1459_p4)  ;;  %v189_v2 = vld [vmem:[%s1475_s30 + $0x10] sm:$0xf] (%p1459_p4) }
  0x13   : > { %186 = vst [vmem:[%s166_s5] sm:$0xf] (%p1459_p4), %v185_v0  ;;  %188 = vst [vmem:[%s166_s5 + $0x4] sm:$0xf] (%p1459_p4), %v187_v1  ;;  %v191_v3 = vld [vmem:[%s1475_s30 + $0x18] sm:$0xf] (%p1459_p4) }
  0x14   : > { %v193_v4 = vld [vmem:[%s1475_s30 + $0x20] sm:$0xf]  ;;  %190 = vst [vmem:[%s166_s5 + $0x8] sm:$0xf] %v189_v2  ;;  %192 = vst [vmem:[%s166_s5 + $0xc] sm:$0xf] %v191_v3 }
  0x15   : > { %194 = vst [vmem:[%s166_s5 + $0x10] sm:$0xf] %v193_v4  ;;  %v195_v5 = vld [vmem:[%s1475_s30 + $0x28] sm:$0xf]  ;;  %v197_v6 = vld [vmem:[%s1475_s30 + $0x30] sm:$0xf] }
  0x16   : > { %v199_v7 = vld [vmem:[%s1475_s30 + $0x38] sm:$0xf]  ;;  %196 = vst [vmem:[%s166_s5 + $0x14] sm:$0xf] %v195_v5  ;;  %198 = vst [vmem:[%s166_s5 + $0x18] sm:$0xf] %v197_v6 }
  0x17   : > { %200 = vst [vmem:[%s166_s5 + $0x1c] sm:$0xf] %v199_v7  ;;  %v201_v8 = vld [vmem:[%s1475_s30 + $0x40] sm:$0xf]  ;;  %v203_v9 = vld [vmem:[%s1475_s30 + $0x48] sm:$0xf] }
  0x18   : > { %v205_v10 = vld [vmem:[%s1475_s30 + $0x50] sm:$0xf]  ;;  %202 = vst [vmem:[%s166_s5 + $0x20] sm:$0xf] %v201_v8  ;;  %204 = vst [vmem:[%s166_s5 + $0x24] sm:$0xf] %v203_v9 }
  0x19   : > { %206 = vst [vmem:[%s166_s5 + $0x28] sm:$0xf] %v205_v10  ;;  %v207_v11 = vld [vmem:[%s1475_s30 + $0x58] sm:$0xf]  ;;  %v209_v12 = vld [vmem:[%s1475_s30 + $0x60] sm:$0xf] }
  0x1a   : > { %v211_v13 = vld [vmem:[%s1475_s30 + $0x68] sm:$0xf]  ;;  %208 = vst [vmem:[%s166_s5 + $0x2c] sm:$0xf] %v207_v11  ;;  %210 = vst [vmem:[%s166_s5 + $0x30] sm:$0xf] %v209_v12 }
  0x1b   : > { %212 = vst [vmem:[%s166_s5 + $0x34] sm:$0xf] %v211_v13  ;;  %v213_v14 = vld [vmem:[%s1475_s30 + $0x70] sm:$0xf]  ;;  %v215_v15 = vld [vmem:[%s1475_s30 + $0x78] sm:$0xf] }
  0x1c   : > { %214 = vst [vmem:[%s166_s5 + $0x38] sm:$0xf] %v213_v14  ;;  %216 = vst [vmem:[%s166_s5 + $0x3c] sm:$0xf] %v215_v15 }
  0x1d PF: > { %272 = sbr.rel (!%p1459_p4) target bundleno = 43 (0x2b), region = 61  ;;  %s274_s6 = sand.u32 (%p1459_p4), 1, %s1397_s16  }
  0x1e   : > { %s1276_s7 = sshll.u32 (%p1459_p4), %s1401_s17, 2  ;;  %s1275_s8 = sshll.u32 (%p1459_p4), %s274_s6, 6 }
  0x1f   : > { %s1500_s11 = scalar_lea.vmem (%p1459_p4), %s2089_s1, %s1276_s7  ;;  %s276_s12 = scalar_lea.vmem (%p1459_p4), [#allocation3], %s1275_s8 }
  0x20   : > { %v295_v16 = vld [vmem:[%s1500_s11] sm:$0xf] (%p1459_p4)  ;;  %v297_v17 = vld [vmem:[%s1500_s11 + $0x8] sm:$0xf] (%p1459_p4)  ;;  %v299_v18 = vld [vmem:[%s1500_s11 + $0x10] sm:$0xf] (%p1459_p4) }
  0x21   : > { %296 = vst [vmem:[%s276_s12] sm:$0xf] (%p1459_p4), %v295_v16  ;;  %298 = vst [vmem:[%s276_s12 + $0x4] sm:$0xf] (%p1459_p4), %v297_v17  ;;  %v301_v19 = vld [vmem:[%s1500_s11 + $0x18] sm:$0xf] (%p1459_p4) }
  0x22   : > { %v303_v20 = vld [vmem:[%s1500_s11 + $0x20] sm:$0xf]  ;;  %300 = vst [vmem:[%s276_s12 + $0x8] sm:$0xf] %v299_v18  ;;  %302 = vst [vmem:[%s276_s12 + $0xc] sm:$0xf] %v301_v19 }
  0x23   : > { %304 = vst [vmem:[%s276_s12 + $0x10] sm:$0xf] %v303_v20  ;;  %v305_v21 = vld [vmem:[%s1500_s11 + $0x28] sm:$0xf]  ;;  %v307_v22 = vld [vmem:[%s1500_s11 + $0x30] sm:$0xf] }
  0x24   : > { %v309_v23 = vld [vmem:[%s1500_s11 + $0x38] sm:$0xf]  ;;  %306 = vst [vmem:[%s276_s12 + $0x14] sm:$0xf] %v305_v21  ;;  %308 = vst [vmem:[%s276_s12 + $0x18] sm:$0xf] %v307_v22 }
  0x25   : > { %310 = vst [vmem:[%s276_s12 + $0x1c] sm:$0xf] %v309_v23  ;;  %v311_v24 = vld [vmem:[%s1500_s11 + $0x40] sm:$0xf]  ;;  %v313_v25 = vld [vmem:[%s1500_s11 + $0x48] sm:$0xf] }
  0x26   : > { %v315_v26 = vld [vmem:[%s1500_s11 + $0x50] sm:$0xf]  ;;  %312 = vst [vmem:[%s276_s12 + $0x20] sm:$0xf] %v311_v24  ;;  %314 = vst [vmem:[%s276_s12 + $0x24] sm:$0xf] %v313_v25 }
  0x27   : > { %316 = vst [vmem:[%s276_s12 + $0x28] sm:$0xf] %v315_v26  ;;  %v317_v27 = vld [vmem:[%s1500_s11 + $0x58] sm:$0xf]  ;;  %v319_v28 = vld [vmem:[%s1500_s11 + $0x60] sm:$0xf] }
  0x28   : > { %v321_v29 = vld [vmem:[%s1500_s11 + $0x68] sm:$0xf]  ;;  %318 = vst [vmem:[%s276_s12 + $0x2c] sm:$0xf] %v317_v27  ;;  %320 = vst [vmem:[%s276_s12 + $0x30] sm:$0xf] %v319_v28 }
  0x29   : > { %322 = vst [vmem:[%s276_s12 + $0x34] sm:$0xf] %v321_v29  ;;  %v323_v30 = vld [vmem:[%s1500_s11 + $0x70] sm:$0xf]  ;;  %v325_v31 = vld [vmem:[%s1500_s11 + $0x78] sm:$0xf] }
  0x2a   : > { %324 = vst [vmem:[%s276_s12 + $0x38] sm:$0xf] %v323_v30  ;;  %326 = vst [vmem:[%s276_s12 + $0x3c] sm:$0xf] %v325_v31 }
  0x2b PF: > { %p1277_p7 = scmp.ge.s32.totalorder %s1401_s17, 1  ;;  %p381_p8 = scmp.lt.s32.totalorder %s1401_s17, 3 }
  0x2d   : > { %p382_p9 = pnand %p1277_p7, %p381_p8 }
  0x2f   : > { %385 = sbr.rel (%p382_p9) target bundleno = 182 (0xb6), region = 102 }
  0x34   : > { %s388_s13 = sand.u32 1, %s1393_s15   ;;  %vm511_vm0 = vcmask 1043456   ;;  %vm752_vm8 = vcmask 1041409   ;;  %vm2098_vm11 = vcmask 1046534   ;;  %vm2097_vm13 = vcmask 1047559   ;;  %s1286_s26 = sshll.u32 (%p1463_p5), %s1444_s18, 3 }
  0x35   : > { %s1523_s14 = sshll.u32 %s388_s13, 6  ;;  %s1280_s21 = sshll.u32 %s388_s13, 4 }
  0x36   : > { %s1526_s20 = scalar_lea.vmem [#allocation2], %s1523_s14  ;;  %s1557_s17 = scalar_lea.vmem [#allocation3], %s1523_s14 }
  0x37   : > { %v1529_v32 = vld [vmem:[%s1526_s20] sm:$0xf]  ;;  %v1532_v33 = vld [vmem:[%s1526_s20 + $0x4] sm:$0xf]  ;;  %v1535_v34 = vld [vmem:[%s1526_s20 + $0x8] sm:$0xf]  ;;  %s889_s29 = scalar_lea.vmem (%p1463_p5), %s2090_s2, %s1286_s26 }
  0x38   : > { %v1538_v35 = vld [vmem:[%s1526_s20 + $0xc] sm:$0xf]  ;;  %v1541_v36 = vld [vmem:[%s1526_s20 + $0x10] sm:$0xf]  ;;  %v1544_v37 = vld [vmem:[%s1526_s20 + $0x14] sm:$0xf]  ;;  %v463_v39 = vmul.f32 %v1529_v32, %v1529_v32  ;;  %v464_v40 = vmul.f32 %v1532_v33, %v1532_v33  ;;  %v465_v44 = vmul.f32 %v1535_v34, %v1535_v34 }
  0x39   : > { %v1547_v38 = vld [vmem:[%s1526_s20 + $0x18] sm:$0xf]  ;;  %v1554_v41 = vld [vmem:[%s1526_s20 + $0x1c] sm:$0xf]  ;;  %v1560_v42 = vld [vmem:[%s1557_s17] sm:$0xf]  ;;  %v466_v45 = vmul.f32 %v1538_v35, %v1538_v35  ;;  %v467_v46 = vmul.f32 %v1541_v36, %v1541_v36  ;;  %v468_v47 = vmul.f32 %v1544_v37, %v1544_v37 }
  0x3a   : > { %v1563_v43 = vld [vmem:[%s1557_s17 + $0x4] sm:$0xf]  ;;  %v1574_v48 = vld [vmem:[%s1557_s17 + $0x8] sm:$0xf]  ;;  %v1577_v49 = vld [vmem:[%s1557_s17 + $0xc] sm:$0xf]  ;;  %v469_v51 = vmul.f32 %v1547_v38, %v1547_v38  ;;  %v470_v52 = vmul.f32 %v1554_v41, %v1554_v41  ;;  %v479_v53 = vmul.f32 %v1560_v42, %v1560_v42 }
  0x3b   : > { %v1580_v50 = vld [vmem:[%s1557_s17 + $0x10] sm:$0xf]  ;;  %v480_v54 = vmul.f32 %v1563_v43, %v1563_v43  ;;  %v1591_v55 = vld [vmem:[%s1557_s17 + $0x14] sm:$0xf]  ;;  %v1594_v56 = vld [vmem:[%s1557_s17 + $0x18] sm:$0xf]  ;;  %v481_v58 = vmul.f32 %v1574_v48, %v1574_v48  ;;  %v482_v59 = vmul.f32 %v1577_v49, %v1577_v49 }
  0x3c   : > { %v1597_v57 = vld [vmem:[%s1557_s17 + $0x1c] sm:$0xf]  ;;  %v483_v60 = vmul.f32 %v1580_v50, %v1580_v50  ;;  %v484_v61 = vmul.f32 %v1591_v55, %v1591_v55  ;;  %v485_v62 = vmul.f32 %v1594_v56, %v1594_v56  ;;  %v495_v0 = vadd.f32 %v479_v53, %v463_v39  ;;  %s1827_s15 = scalar_lea.vmem [#allocation4], %s1280_s21  ;;  %s1960_s23 = scalar_lea.vmem [#allocation5], %s1523_s14 }
  0x3d   : > { %v486_v63 = vmul.f32 %v1597_v57, %v1597_v57  ;;  %v496_v1 = vadd.f32 %v480_v54, %v464_v40  ;;  %v497_v2 = vadd.f32 %v481_v58, %v465_v44  ;;  %v498_v3 = vadd.f32 %v482_v59, %v466_v45  ;;  %s1969_s25 = scalar_lea.vmem [#allocation6], %s1523_s14 }
  0x3e   : > { %v499_v4 = vadd.f32 %v483_v60, %v467_v46  ;;  %v500_v5 = vadd.f32 %v484_v61, %v468_v47  ;;  %v501_v6 = vadd.f32 %v485_v62, %v469_v51  ;;  %v512_v8 = vsel %vm511_vm0, %v495_v0, 0.0 }
  0x3f   : > { %v502_v7 = vadd.f32 %v486_v63, %v470_v52  ;;  %v513_v9 = vrot.slane %v512_v8, 4  ;;  %v519_v10 = vsel %vm511_vm0, %v496_v1, 0.0  ;;  %v526_v11 = vsel %vm511_vm0, %v497_v2, 0.0 }
  0x40   : > { %v533_v12 = vsel %vm511_vm0, %v498_v3, 0.0  ;;  %v520_v13 = vrot.slane %v519_v10, 4  ;;  %v527_v14 = vrot.slane %v526_v11, 4  ;;  %v540_v16 = vsel %vm511_vm0, %v499_v4, 0.0 }
  0x41   : > { %v534_v15 = vrot.slane %v533_v12, 4  ;;  %v514_v17 = vadd.f32 %v513_v9, %v512_v8  ;;  %v541_v18 = vrot.slane %v540_v16, 4  ;;  %v547_v19 = vsel %vm511_vm0, %v500_v5, 0.0 }
  0x42   : > { %v554_v20 = vsel %vm511_vm0, %v501_v6, 0.0  ;;  %v521_v21 = vadd.f32 %v520_v13, %v519_v10  ;;  %v528_v22 = vadd.f32 %v527_v14, %v526_v11  ;;  %v548_v24 = vrot.slane %v547_v19, 4 }
  0x43   : > { %v535_v23 = vadd.f32 %v534_v15, %v533_v12  ;;  %v515_v25 = vrot.slane %v514_v17, 2  ;;  %v542_v26 = vadd.f32 %v541_v18, %v540_v16  ;;  %v555_v27 = vrot.slane %v554_v20, 4  ;;  %v1640_v16 = vld [vmem:[%s1526_s20 + $0x20] sm:$0xf]  ;;  %v1647_v18 = vld [vmem:[%s1526_s20 + $0x28] sm:$0xf] }
  0x44   : > { %v561_v28 = vsel %vm511_vm0, %v502_v7, 0.0  ;;  %v522_v29 = vrot.slane %v521_v21, 2  ;;  %v529_v30 = vrot.slane %v528_v22, 2  ;;  %v549_v39 = vadd.f32 %v548_v24, %v547_v19  ;;  %v1650_v19 = vld [vmem:[%s1526_s20 + $0x2c] sm:$0xf] }
  0x45   : > { %v536_v31 = vrot.slane %v535_v23, 2  ;;  %v516_v40 = vadd.f32 %v515_v25, %v514_v17  ;;  %v543_v44 = vrot.slane %v542_v26, 2  ;;  %v556_v45 = vadd.f32 %v555_v27, %v554_v20  ;;  %v1644_v17 = vld [vmem:[%s1526_s20 + $0x24] sm:$0xf]  ;;  %v1653_v20 = vld [vmem:[%s1526_s20 + $0x30] sm:$0xf] }
  0x46   : > { %v562_v46 = vrot.slane %v561_v28, 4  ;;  %v523_v47 = vadd.f32 %v522_v29, %v521_v21  ;;  %v530_v51 = vadd.f32 %v529_v30, %v528_v22  ;;  %v550_v53 = vrot.slane %v549_v39, 2  ;;  %v1659_v21 = vld [vmem:[%s1526_s20 + $0x34] sm:$0xf]  ;;  %v1662_v22 = vld [vmem:[%s1526_s20 + $0x38] sm:$0xf] }
  0x47   : > { %v537_v52 = vadd.f32 %v536_v31, %v535_v23  ;;  %v517_v54 = vrot.slane %v516_v40, 1  ;;  %v544_v58 = vadd.f32 %v543_v44, %v542_v26  ;;  %v557_v59 = vrot.slane %v556_v45, 2  ;;  %2101 = vst [vmem:[#allocation7_spill] sm:$0xff] %v1662_v22  ;;  %v1665_v23 = vld [vmem:[%s1526_s20 + $0x3c] sm:$0xf] }
  0x48   : > { %v563_v60 = vadd.f32 %v562_v46, %v561_v28  ;;  %v524_v61 = vrot.slane %v523_v47, 1  ;;  %v531_v62 = vrot.slane %v530_v51, 1  ;;  %v551_v0 = vadd.f32 %v550_v53, %v549_v39  ;;  %2102 = vst [vmem:[#allocation8_spill] sm:$0xff] %v1665_v23  ;;  %v1668_v24 = vld [vmem:[%s1557_s17 + $0x20] sm:$0xf] }
  0x49   : > { %v538_v63 = vrot.slane %v537_v52, 1  ;;  %v1619_v1 = vadd.f32 %v517_v54, %v516_v40  ;;  %v545_v2 = vrot.slane %v544_v58, 1  ;;  %v558_v3 = vadd.f32 %v557_v59, %v556_v45  ;;  %v1675_v27 = vld [vmem:[%s1557_s17 + $0x24] sm:$0xf]  ;;  %v1678_v28 = vld [vmem:[%s1557_s17 + $0x28] sm:$0xf] }
  0x4a   : > { %v564_v4 = vrot.slane %v563_v60, 2  ;;  %v1621_v5 = vadd.f32 %v524_v61, %v523_v47  ;;  %v1623_v6 = vadd.f32 %v531_v62, %v530_v51  ;;  %v552_v7 = vrot.slane %v551_v0, 1  ;;  %v1687_v39 = vld [vmem:[%s1557_s17 + $0x2c] sm:$0xf]  ;;  %v1695_v46 = vld [vmem:[%s1557_s17 + $0x30] sm:$0xf] }
  0x4b   : > { %v1625_v8 = vadd.f32 %v538_v63, %v537_v52  ;;  %v559_v9 = vrot.slane %v558_v3, 1  ;;  %1315 = vrsqrt.f32 %v1619_v1  ;;  %v1628_v11 = vadd.f32 %v545_v2, %v544_v58  ;;  %v1702_v51 = vld [vmem:[%s1557_s17 + $0x34] sm:$0xf]  ;;  %v1705_v52 = vld [vmem:[%s1557_s17 + $0x38] sm:$0xf] }
  0x4c   : > { %v565_v10 = vadd.f32 %v564_v4, %v563_v60  ;;  %v1630_v12 = vadd.f32 %v552_v7, %v551_v0  ;;  %1317 = vrsqrt.f32 %v1621_v5  ;;  %vm626_vm1 = vcmp.eq.f32.partialorder %v1619_v1, inf  ;;  %2103 = vst [vmem:[#allocation9_spill] sm:$0xff] %v1702_v51  ;;  %2104 = vst [vmem:[#allocation10_spill] sm:$0xff] %v1705_v52  ;;  %v1708_v53 = vld [vmem:[%s1557_s17 + $0x3c] sm:$0xf] }
  0x4d   : > { %v1633_v14 = vadd.f32 %v559_v9, %v558_v3  ;;  %1319 = vrsqrt.f32 %v1623_v6  ;;  %vm628_vm2 = vcmp.eq.f32.partialorder %v1619_v1, 0.0  ;;  %vm633_vm3 = vcmp.eq.f32.partialorder %v1621_v5, inf }
  0x4e   : > { %v566_v13 = vrot.slane %v565_v10, 1  ;;  %1321 = vrsqrt.f32 %v1625_v8  ;;  %vm635_vm4 = vcmp.eq.f32.partialorder %v1621_v5, 0.0  ;;  %vm640_vm5 = vcmp.eq.f32.partialorder %v1623_v6, inf }
  0x4f   : > { %1323 = vrsqrt.f32 %v1628_v11  ;;  %vm642_vm6 = vcmp.eq.f32.partialorder %v1623_v6, 0.0  ;;  %vm647_vm7 = vcmp.eq.f32.partialorder %v1625_v8, inf  ;;  %v471_v47 = vmul.f32 %v1640_v16, %v1640_v16 }
  0x50   : > { %v1636_v15 = vadd.f32 %v566_v13, %v565_v10  ;;  %1325 = vrsqrt.f32 %v1630_v12  ;;  %vm649_vm9 = vcmp.eq.f32.partialorder %v1625_v8, 0.0  ;;  %vm654_vm10 = vcmp.eq.f32.partialorder %v1628_v11, inf }
  0x51   : > { %1327 = vrsqrt.f32 %v1633_v14  ;;  %v472_v54 = vmul.f32 %v1644_v17, %v1644_v17  ;;  %v473_v58 = vmul.f32 %v1647_v18, %v1647_v18  ;;  %v474_v59 = vmul.f32 %v1650_v19, %v1650_v19 }
  0x52   : > { %1329 = vrsqrt.f32 %v1636_v15  ;;  %v475_v60 = vmul.f32 %v1653_v20, %v1653_v20  ;;  %v476_v61 = vmul.f32 %v1659_v21, %v1659_v21  ;;  %v477_v62 = vmul.f32 %v1662_v22, %v1662_v22 }
  0x53   : > { %v478_v63 = vmul.f32 %v1665_v23, %v1665_v23  ;;  %v487_v0 = vmul.f32 %v1668_v24, %v1668_v24  ;;  %v488_v2 = vmul.f32 %v1675_v27, %v1675_v27  ;;  %v489_v3 = vmul.f32 %v1678_v28, %v1678_v28 }
  0x54   : > { %v490_v4 = vmul.f32 %v1687_v39, %v1687_v39  ;;  %v491_v7 = vmul.f32 %v1695_v46, %v1695_v46  ;;  %vm670_vm14 = vcmp.eq.f32.partialorder %v1633_v14, 0.0  ;;  %vm675_vm15 = vcmp.eq.f32.partialorder %v1636_v15, inf }
  0x55   : > { %v492_v10 = vmul.f32 %v1702_v51, %v1702_v51  ;;  %v493_v13 = vmul.f32 %v1705_v52, %v1705_v52  ;;  %v494_v45 = vmul.f32 %v1708_v53, %v1708_v53  ;;  %v503_v44 = vadd.f32 %v487_v0, %v471_v47 }
  0x56   : > { %vm677_vm12 = vcmp.eq.f32.partialorder %v1636_v15, 0.0  ;;  %v504_v31 = vadd.f32 %v488_v2, %v472_v54  ;;  %v505_v30 = vadd.f32 %v489_v3, %v473_v58  ;;  %v506_v29 = vadd.f32 %v490_v4, %v474_v59 }
  0x57   : > { %v507_v25 = vadd.f32 %v491_v7, %v475_v60  ;;  %v508_v23 = vadd.f32 %v492_v10, %v476_v61  ;;  %v509_v22 = vadd.f32 %v493_v13, %v477_v62  ;;  %v1748_v51 = vadd.f32 %v494_v45, %v478_v63 }
  0x58   : > { %v1316_v9 = vpop.eup %1315  ;;  %v575_v54 = vsel %vm511_vm0, %v504_v31, 0.0  ;;  %v2105_v59 = vand.u32 2147483648, %v1619_v1  ;;  %v582_v31 = vsel %vm511_vm0, %v505_v30, 0.0  ;;  %v2106_v3 = vand.u32 2147483648, %v1621_v5 }
  0x59   : > { %v625_v40 = vmul.f32 %v1316_v9, %v1619_v1  ;;  %v1318_v26 = vpop.eup %1317  ;;  %v568_v9 = vsel %vm511_vm0, %v503_v44, 0.0  ;;  %v576_v62 = vrot.slane %v575_v54, 4  ;;  %v589_v44 = vsel %vm511_vm0, %v506_v29, 0.0 }
  0x5a   : > { %v1320_v52 = vpop.eup %1319  ;;  %v632_v0 = vmul.f32 %v1318_v26, %v1621_v5  ;;  %v569_v61 = vrot.slane %v568_v9, 4 }
  0x5b   : > { %v627_v47 = vsel %vm626_vm1, %v1619_v1, %v625_v40  ;;  %v1322_v58 = vpop.eup %1321  ;;  %v639_v45 = vmul.f32 %v1320_v52, %v1623_v6  ;;  %vm2109_vm1 = vcmask 1042434  }
  0x5c   : > { %v630_v60 = vsel %vm628_vm2, %v2105_v59, %v627_v47  ;;  %v1324_v63 = vpop.eup %1323  ;;  %v634_v26 = vsel %vm633_vm3, %v1621_v5, %v632_v0  ;;  %v646_v40 = vmul.f32 %v1322_v58, %v1625_v8  ;;  %v570_v10 = vadd.f32 %v569_v61, %v568_v9 }
  0x5d   : > { %v1326_v2 = vpop.eup %1325  ;;  %v637_v52 = vsel %vm635_vm4, %v2106_v3, %v634_v26  ;;  %v641_v4 = vsel %vm640_vm5, %v1623_v6, %v639_v45  ;;  %v653_v7 = vmul.f32 %v1324_v63, %v1628_v11  ;;  %v2107_v47 = vand.u32 2147483648, %v1623_v6 }
  0x5e   : > { %v1328_v13 = vpop.eup %1327  ;;  %v648_v29 = vsel %vm647_vm7, %v1625_v8, %v646_v40  ;;  %v660_v0 = vmul.f32 %v1326_v2, %v1630_v12  ;;  %v753_v58 = vsel %vm752_vm8, %v637_v52, %v630_v60  ;;  %v2108_v45 = vand.u32 2147483648, %v1625_v8 }
  0x5f   : > { %v644_v30 = vsel %vm642_vm6, %v2107_v47, %v641_v4  ;;  %v1330_v59 = vpop.eup %1329  ;;  %v655_v61 = vsel %vm654_vm10, %v1628_v11, %v653_v7  ;;  %v667_v63 = vmul.f32 %v1328_v13, %v1633_v14  ;;  %v2110_v40 = vand.u32 2147483648, %v1628_v11 }
  0x60   : > { %v651_v9 = vsel %vm649_vm9, %v2108_v45, %v648_v29  ;;  %v755_v26 = vsel %vm2109_vm1, %v644_v30, %v753_v58  ;;  %vm2111_vm2 = vcmp.eq.f32.partialorder %v1628_v11, 0.0  ;;  %vm2112_vm3 = vcmp.eq.f32.partialorder %v1630_v12, inf }
  0x61   : > { %v658_v60 = vsel %vm2111_vm2, %v2110_v40, %v655_v61  ;;  %v662_v2 = vsel %vm2112_vm3, %v1630_v12, %v660_v0  ;;  %v674_v3 = vmul.f32 %v1330_v59, %v1636_v15  ;;  %vm2113_vm4 = vcmask 1043459  }
  0x62   : > { %v757_v52 = vsel %vm2113_vm4, %v651_v9, %v755_v26  ;;  %v2114_v4 = vand.u32 2147483648, %v1630_v12  ;;  %vm2115_vm5 = vcmp.eq.f32.partialorder %v1630_v12, 0.0  ;;  %vm2116_vm6 = vcmp.eq.f32.partialorder %v1633_v14, inf }
  0x63   : > { %v669_v13 = vsel %vm2116_vm6, %v1633_v14, %v667_v63  ;;  %vm2117_vm7 = vcmask 1044484   ;;  %v571_v30 = vrot.slane %v570_v10, 2  ;;  %v2118_v29 = vand.u32 2147483648, %v1633_v14 }
  0x64   : > { %v665_v7 = vsel %vm2115_vm5, %v2114_v4, %v662_v2  ;;  %v759_v47 = vsel %vm2117_vm7, %v658_v60, %v757_v52  ;;  %v676_v58 = vsel %vm675_vm15, %v1636_v15, %v674_v3  ;;  %vm2119_vm9 = vcmask 1045509  }
  0x65   : > { %v672_v0 = vsel %vm670_vm14, %v2118_v29, %v669_v13  ;;  %v761_v59 = vsel %vm2119_vm9, %v665_v7, %v759_v47  ;;  %v577_v45 = vadd.f32 %v576_v62, %v575_v54  ;;  %v2120_v9 = vand.u32 2147483648, %v1636_v15 }
  0x66   : > { %v763_v63 = vsel %vm2098_vm11, %v672_v0, %v761_v59  ;;  %v572_v26 = vadd.f32 %v571_v30, %v570_v10  ;;  %v583_v40 = vrot.slane %v582_v31, 4  ;;  %v590_v52 = vrot.slane %v589_v44, 4 }
  0x67   : > { %v679_v61 = vsel %vm677_vm12, %v2120_v9, %v676_v58  ;;  %v578_v2 = vrot.slane %v577_v45, 2  ;;  %v596_v4 = vsel %vm511_vm0, %v507_v25, 0.0  ;;  %v603_v7 = vsel %vm511_vm0, %v508_v23, 0.0 }
  0x68   : > { %v765_v60 = vsel %vm2097_vm13, %v679_v61, %v763_v63  ;;  %v573_v54 = vrot.slane %v572_v26, 1  ;;  %v584_v62 = vadd.f32 %v583_v40, %v582_v31  ;;  %v597_v3 = vrot.slane %v596_v4, 4 }
  0x69   : > { %775 = vst [vmem:[%s1827_s15] sm:$0xff] %v765_v60  ;;  %v579_v13 = vadd.f32 %v578_v2, %v577_v45  ;;  %v591_v47 = vadd.f32 %v590_v52, %v589_v44  ;;  %v604_v29 = vrot.slane %v603_v7, 4  ;;  %v610_v10 = vsel %vm511_vm0, %v509_v22, 0.0 }
  0x6a   : > { %v1832_v30 = vadd.f32 %v573_v54, %v572_v26  ;;  %v585_v0 = vrot.slane %v584_v62, 2  ;;  %v598_v58 = vadd.f32 %v597_v3, %v596_v4  ;;  %v611_v59 = vrot.slane %v610_v10, 4 }
  0x6b   : > { %v580_v25 = vrot.slane %v579_v13, 1  ;;  %v592_v9 = vrot.slane %v591_v47, 2  ;;  %v605_v61 = vadd.f32 %v604_v29, %v603_v7  ;;  %v617_v63 = vsel %vm511_vm0, %v1748_v51, 0.0 }
  0x6c   : > { %v586_v31 = vadd.f32 %v585_v0, %v584_v62  ;;  %v599_v40 = vrot.slane %v598_v58, 2  ;;  %v612_v60 = vadd.f32 %v611_v59, %v610_v10  ;;  %v618_v23 = vrot.slane %v617_v63, 4 }
  0x6d   : > { %v1836_v45 = vadd.f32 %v580_v25, %v579_v13  ;;  %v593_v44 = vadd.f32 %v592_v9, %v591_v47  ;;  %v606_v2 = vrot.slane %v605_v61, 2  ;;  %1331 = vrsqrt.f32 %v1832_v30 }
  0x6e   : > { %v587_v22 = vrot.slane %v586_v31, 1  ;;  %v600_v26 = vadd.f32 %v599_v40, %v598_v58  ;;  %v613_v52 = vrot.slane %v612_v60, 2  ;;  %v619_v4 = vadd.f32 %v618_v23, %v617_v63 }
  0x6f   : > { %v594_v54 = vrot.slane %v593_v44, 1  ;;  %v607_v3 = vadd.f32 %v606_v2, %v605_v61  ;;  %1333 = vrsqrt.f32 %v1836_v45  ;;  %vm682_vm0 = vcmp.eq.f32.partialorder %v1832_v30, inf }
  0x70   : > { %v1839_v7 = vadd.f32 %v587_v22, %v586_v31  ;;  %v601_v29 = vrot.slane %v600_v26, 1  ;;  %v614_v51 = vadd.f32 %v613_v52, %v612_v60  ;;  %v620_v62 = vrot.slane %v619_v4, 2 }
  0x71   : > { %v1841_v0 = vadd.f32 %v594_v54, %v593_v44  ;;  %v608_v10 = vrot.slane %v607_v3, 1  ;;  %vm684_vm10 = vcmp.eq.f32.partialorder %v1832_v30, 0.0  ;;  %v685_v63 = vand.u32 2147483648, %v1832_v30 }
  0x72   : > { %v1844_v13 = vadd.f32 %v601_v29, %v600_v26  ;;  %v615_v47 = vrot.slane %v614_v51, 1  ;;  %v621_v59 = vadd.f32 %v620_v62, %v619_v4  ;;  %1335 = vrsqrt.f32 %v1839_v7 }
  0x73   : > { %v1846_v25 = vadd.f32 %v608_v10, %v607_v3  ;;  %1337 = vrsqrt.f32 %v1841_v0  ;;  %vm689_vm12 = vcmp.eq.f32.partialorder %v1836_v45, inf  ;;  %vm691_vm14 = vcmp.eq.f32.partialorder %v1836_v45, 0.0 }
  0x74   : > { %v1849_v58 = vadd.f32 %v615_v47, %v614_v51  ;;  %v622_v9 = vrot.slane %v621_v59, 1  ;;  %1339 = vrsqrt.f32 %v1844_v13  ;;  %v692_v31 = vand.u32 2147483648, %v1836_v45 }
  0x75   : > { %1341 = vrsqrt.f32 %v1846_v25  ;;  %vm696_vm15 = vcmp.eq.f32.partialorder %v1839_v7, inf  ;;  %vm698_vm1 = vcmp.eq.f32.partialorder %v1839_v7, 0.0  ;;  %v699_v40 = vand.u32 2147483648, %v1839_v7 }
  0x76   : > { %v1852_v61 = vadd.f32 %v622_v9, %v621_v59  ;;  %1343 = vrsqrt.f32 %v1849_v58  ;;  %vm703_vm2 = vcmp.eq.f32.partialorder %v1841_v0, inf  ;;  %v706_v23 = vand.u32 2147483648, %v1841_v0 }
  0x77   : > { %v777_v44 = vadd.f32 1e-30, %v1619_v1  ;;  %v778_v2 = vadd.f32 1e-30, %v1621_v5  ;;  %vm705_vm3 = vcmp.eq.f32.partialorder %v1841_v0, 0.0  ;;  %vm710_vm4 = vcmp.eq.f32.partialorder %v1844_v13, inf }
  0x78   : > { %1345 = vrsqrt.f32 %v1852_v61  ;;  %v713_v26 = vand.u32 2147483648, %v1844_v13  ;;  %v779_v52 = vadd.f32 1e-30, %v1623_v6  ;;  %v780_v4 = vadd.f32 1e-30, %v1625_v8 }
  0x79   : > { %vm712_vm5 = vcmp.eq.f32.partialorder %v1844_v13, 0.0  ;;  %vm717_vm6 = vcmp.eq.f32.partialorder %v1846_v25, inf  ;;  %v720_v1 = vand.u32 2147483648, %v1846_v25  ;;  %1347 = vrsqrt.f32 %v777_v44 }
  0x7a   : > { %v1332_v60 = vpop.eup %1331  ;;  %v781_v5 = vadd.f32 1e-30, %v1628_v11  ;;  %vm719_vm7 = vcmp.eq.f32.partialorder %v1846_v25, 0.0  ;;  %vm724_vm9 = vcmp.eq.f32.partialorder %v1849_v58, inf  ;;  %v727_v6 = vand.u32 2147483648, %v1849_v58 }
  0x7b   : > { %v681_v22 = vmul.f32 %v1332_v60, %v1832_v30  ;;  %1349 = vrsqrt.f32 %v778_v2  ;;  %v782_v8 = vadd.f32 1e-30, %v1630_v12  ;;  %vm726_vm13 = vcmp.eq.f32.partialorder %v1849_v58, 0.0 }
  0x7c   : > { %v1334_v3 = vpop.eup %1333  ;;  %vm731_vm11 = vcmp.eq.f32.partialorder %v1852_v61, inf  ;;  %v734_v11 = vand.u32 2147483648, %v1852_v61  ;;  %1351 = vrsqrt.f32 %v779_v52  ;;  %v783_v29 = vadd.f32 1e-30, %v1633_v14 }
  0x7d   : > { %v683_v54 = vsel %vm682_vm0, %v1832_v30, %v681_v22  ;;  %v784_v51 = vadd.f32 1e-30, %v1636_v15  ;;  %v688_v62 = vmul.f32 %v1334_v3, %v1836_v45  ;;  %vm733_vm0 = vcmp.eq.f32.partialorder %v1852_v61, 0.0 }
  0x7e   : > { %1353 = vrsqrt.f32 %v780_v4  ;;  %v785_v10 = vadd.f32 1e-30, %v1832_v30  ;;  %v786_v12 = vadd.f32 1e-30, %v1836_v45  ;;  %v686_v59 = vsel %vm684_vm10, %v685_v63, %v683_v54 }
  0x7f   : > { %v1336_v47 = vpop.eup %1335  ;;  %1355 = vrsqrt.f32 %v781_v5  ;;  %v787_v9 = vadd.f32 1e-30, %v1839_v7  ;;  %v788_v14 = vadd.f32 1e-30, %v1841_v0  ;;  %v690_v15 = vsel %vm689_vm12, %v1836_v45, %v688_v62 }
  0x80   : > { %v695_v60 = vmul.f32 %v1336_v47, %v1839_v7  ;;  %1357 = vrsqrt.f32 %v782_v8  ;;  %v789_v44 = vadd.f32 1e-30, %v1844_v13  ;;  %v1338_v2 = vpop.eup %1337  ;;  %v693_v22 = vsel %vm691_vm14, %v692_v31, %v690_v15 }
  0x81   : > { %1359 = vrsqrt.f32 %v783_v29  ;;  %v790_v30 = vadd.f32 1e-30, %v1846_v25  ;;  %v791_v63 = vadd.f32 1e-30, %v1849_v58  ;;  %v1340_v52 = vpop.eup %1339  ;;  %v702_v5 = vmul.f32 %v1338_v2, %v1841_v0 }
  0x82   : > { %v697_v4 = vsel %vm696_vm15, %v1839_v7, %v695_v60  ;;  %v766_v54 = vsel %vm752_vm8, %v693_v22, %v686_v59  ;;  %1361 = vrsqrt.f32 %v784_v51  ;;  %v1342_v8 = vpop.eup %1341  ;;  %v709_v31 = vmul.f32 %v1340_v52, %v1844_v13 }
  0x83   : > { %v700_v45 = vsel %vm698_vm1, %v699_v40, %v697_v4  ;;  %1363 = vrsqrt.f32 %v785_v10  ;;  %v792_v3 = vadd.f32 1e-30, %v1852_v61  ;;  %v1344_v29 = vpop.eup %1343  ;;  %v704_v62 = vsel %vm703_vm2, %v1841_v0, %v702_v5 }
  0x84   : > { %v716_v47 = vmul.f32 %v1342_v8, %v1846_v25  ;;  %vm2121_vm10 = vcmask 1042434   ;;  %1365 = vrsqrt.f32 %v786_v12  ;;  %v707_v7 = vsel %vm705_vm3, %v706_v23, %v704_v62 }
  0x85   : > { %v767_v15 = vsel %vm2121_vm10, %v700_v45, %v766_v54  ;;  %v1346_v51 = vpop.eup %1345  ;;  %v711_v40 = vsel %vm710_vm4, %v1844_v13, %v709_v31  ;;  %v723_v10 = vmul.f32 %v1344_v29, %v1849_v58  ;;  %1367 = vrsqrt.f32 %v787_v9 }
  0x86   : > { %v714_v59 = vsel %vm712_vm5, %v713_v26, %v711_v40  ;;  %v718_v12 = vsel %vm717_vm6, %v1846_v25, %v716_v47  ;;  %v730_v60 = vmul.f32 %v1346_v51, %v1852_v61  ;;  %vm2122_vm8 = vcmask 1043459   ;;  %v1348_v13 = vpop.eup %1347 }
  0x87   : > { %v768_v2 = vsel %vm2122_vm8, %v707_v7, %v767_v15  ;;  %v721_v0 = vsel %vm719_vm7, %v720_v1, %v718_v12  ;;  %v725_v23 = vsel %vm724_vm9, %v1849_v58, %v723_v10  ;;  %vm2123_vm12 = vcmask 1044484   ;;  %v2130_v12 = vld [vmem:[#allocation8_spill] sm:$0xff] }
  0x88   : > { %v769_v9 = vsel %vm2123_vm12, %v714_v59, %v768_v2  ;;  %1369 = vrsqrt.f32 %v788_v14  ;;  %v728_v26 = vsel %vm726_vm13, %v727_v6, %v725_v23  ;;  %v732_v22 = vsel %vm731_vm11, %v1852_v61, %v730_v60  ;;  %v1350_v1 = vpop.eup %1349  ;;  %v2129_v59 = vld [vmem:[#allocation10_spill] sm:$0xff] }
  0x89   : > { %vm2124_vm14 = vcmask 1045509   ;;  %1371 = vrsqrt.f32 %v789_v44  ;;  %v735_v52 = vsel %vm733_vm0, %v734_v11, %v732_v22  ;;  %vm2125_vm15 = vcmask 1046534   ;;  %v1352_v58 = vpop.eup %1351 }
  0x8a   : > { %v770_v25 = vsel %vm2124_vm14, %v721_v0, %v769_v9  ;;  %v809_v14 = vmul.f32 %v1348_v13, %v1529_v32  ;;  %1373 = vrsqrt.f32 %v790_v30  ;;  %vm2126_vm1 = vcmask 1047559  }
  0x8b   : > { %v771_v4 = vsel %vm2125_vm15, %v728_v26, %v770_v25  ;;  %v810_v5 = vmul.f32 %v1350_v1, %v1532_v33  ;;  %1375 = vrsqrt.f32 %v791_v63  ;;  %v841_v54 = vmul.f32 %v1348_v13, %v1560_v42  ;;  %v1354_v8 = vpop.eup %1353 }
  0x8c   : > { %v772_v6 = vsel %vm2126_vm1, %v735_v52, %v771_v4  ;;  %825 = vst [vmem:[%s1960_s23] sm:$0xf] %v809_v14  ;;  %v811_v32 = vmul.f32 %v1352_v58, %v1535_v34  ;;  %1377 = vrsqrt.f32 %v792_v3  ;;  %v842_v61 = vmul.f32 %v1350_v1, %v1563_v43  ;;  %v1356_v33 = vpop.eup %1355 }
  0x8d   : > { %776 = vst [vmem:[%s1827_s15 + $0x8] sm:$0xff] %v772_v6  ;;  %v843_v11 = vmul.f32 %v1352_v58, %v1574_v48  ;;  %826 = vst [vmem:[%s1960_s23 + $0x4] sm:$0xf] %v810_v5  ;;  %v812_v42 = vmul.f32 %v1354_v8, %v1538_v35  ;;  %v844_v34 = vmul.f32 %v1354_v8, %v1577_v49  ;;  %v1358_v44 = vpop.eup %1357 }
  0x8e   : > { %857 = vst [vmem:[%s1969_s25] sm:$0xf] %v841_v54  ;;  %827 = vst [vmem:[%s1960_s23 + $0x8] sm:$0xf] %v811_v32  ;;  %v813_v43 = vmul.f32 %v1356_v33, %v1541_v36  ;;  %v845_v35 = vmul.f32 %v1356_v33, %v1580_v50  ;;  %v1360_v48 = vpop.eup %1359  ;;  %v814_v30 = vmul.f32 %v1358_v44, %v1544_v37 }
  0x8f   : > { %858 = vst [vmem:[%s1969_s25 + $0x4] sm:$0xf] %v842_v61  ;;  %859 = vst [vmem:[%s1969_s25 + $0x8] sm:$0xf] %v843_v11  ;;  %v846_v63 = vmul.f32 %v1358_v44, %v1591_v55  ;;  %v1362_v49 = vpop.eup %1361  ;;  %v815_v45 = vmul.f32 %v1360_v48, %v1547_v38  ;;  %v847_v36 = vmul.f32 %v1360_v48, %v1594_v56 }
  0x90   : > { %828 = vst [vmem:[%s1960_s23 + $0xc] sm:$0xf] %v812_v42  ;;  %860 = vst [vmem:[%s1969_s25 + $0xc] sm:$0xf] %v844_v34  ;;  %v1364_v50 = vpop.eup %1363  ;;  %v816_v31 = vmul.f32 %v1362_v49, %v1554_v41  ;;  %v848_v37 = vmul.f32 %v1362_v49, %v1597_v57 }
  0x91   : > { %829 = vst [vmem:[%s1960_s23 + $0x10] sm:$0xf] %v813_v43  ;;  %861 = vst [vmem:[%s1969_s25 + $0x10] sm:$0xf] %v845_v35  ;;  %v1366_v55 = vpop.eup %1365  ;;  %v817_v3 = vmul.f32 %v1364_v50, %v1640_v16  ;;  %v849_v38 = vmul.f32 %v1364_v50, %v1668_v24 }
  0x92   : > { %830 = vst [vmem:[%s1960_s23 + $0x14] sm:$0xf] %v814_v30  ;;  %862 = vst [vmem:[%s1969_s25 + $0x14] sm:$0xf] %v846_v63  ;;  %v1368_v56 = vpop.eup %1367  ;;  %v818_v29 = vmul.f32 %v1366_v55, %v1644_v17  ;;  %v850_v41 = vmul.f32 %v1366_v55, %v1675_v27 }
  0x93   : > { %831 = vst [vmem:[%s1960_s23 + $0x18] sm:$0xf] %v815_v45  ;;  %863 = vst [vmem:[%s1969_s25 + $0x18] sm:$0xf] %v847_v36  ;;  %v819_v57 = vmul.f32 %v1368_v56, %v1647_v18  ;;  %v851_v16 = vmul.f32 %v1368_v56, %v1678_v28 }
  0x94   : > { %832 = vst [vmem:[%s1960_s23 + $0x1c] sm:$0xf] %v816_v31  ;;  %864 = vst [vmem:[%s1969_s25 + $0x1c] sm:$0xf] %v848_v37  ;;  %v922_v2 = vld [vmem:[%s1827_s15 + $0x8] sm:$0xff] (%p1463_p5) }
  0x95   : > { %833 = vst [vmem:[%s1960_s23 + $0x20] sm:$0xf] %v817_v3  ;;  %865 = vst [vmem:[%s1969_s25 + $0x20] sm:$0xf] %v849_v38  ;;  %v1370_v62 = vpop.eup %1369 }
  0x96   : > { %834 = vst [vmem:[%s1960_s23 + $0x24] sm:$0xf] %v818_v29  ;;  %866 = vst [vmem:[%s1969_s25 + $0x24] sm:$0xf] %v850_v41  ;;  %v1372_v24 = vpop.eup %1371  ;;  %v820_v17 = vmul.f32 %v1370_v62, %v1650_v19  ;;  %v852_v27 = vmul.f32 %v1370_v62, %v1687_v39  ;;  %v2127_v19 = vld [vmem:[#allocation9_spill] sm:$0xff]  ;;  %v2128_v39 = vld [vmem:[#allocation7_spill] sm:$0xff] }
  0x97   : > { %835 = vst [vmem:[%s1960_s23 + $0x28] sm:$0xf] %v819_v57  ;;  %867 = vst [vmem:[%s1969_s25 + $0x28] sm:$0xf] %v851_v16  ;;  %v1374_v47 = vpop.eup %1373  ;;  %v821_v18 = vmul.f32 %v1372_v24, %v1653_v20  ;;  %v853_v28 = vmul.f32 %v1372_v24, %v1695_v46 }
  0x98   : > { %v1376_v15 = vpop.eup %1375  ;;  %836 = vst [vmem:[%s1960_s23 + $0x2c] sm:$0xf] %v820_v17  ;;  %v822_v51 = vmul.f32 %v1374_v47, %v1659_v21  ;;  %868 = vst [vmem:[%s1969_s25 + $0x2c] sm:$0xf] %v852_v27  ;;  %v854_v7 = vmul.f32 %v1374_v47, %v2127_v19  ;;  %887 = sbr.rel (!%p1463_p5) target bundleno = 158 (0x9e), region = 114  ;;  %v920_v21 = vld [vmem:[%s1827_s15] sm:$0xff] (%p1463_p5) }
  0x99   : > { %v1378_v40 = vpop.eup %1377  ;;  %837 = vst [vmem:[%s1960_s23 + $0x30] sm:$0xf] %v821_v18  ;;  %v823_v10 = vmul.f32 %v1376_v15, %v2128_v39  ;;  %869 = vst [vmem:[%s1969_s25 + $0x30] sm:$0xf] %v853_v28  ;;  %v855_v20 = vmul.f32 %v1376_v15, %v2129_v59 }
  0x9a   : > { %838 = vst [vmem:[%s1960_s23 + $0x34] sm:$0xf] %v822_v51  ;;  %v824_v46 = vmul.f32 %v1378_v40, %v2130_v12  ;;  %870 = vst [vmem:[%s1969_s25 + $0x34] sm:$0xf] %v854_v7  ;;  %v856_v60 = vmul.f32 %v1378_v40, %v1708_v53 }
  0x9b   : > { %839 = vst [vmem:[%s1960_s23 + $0x38] sm:$0xf] %v823_v10  ;;  %871 = vst [vmem:[%s1969_s25 + $0x38] sm:$0xf] %v855_v20 }
  0x9c   : > { %840 = vst [vmem:[%s1960_s23 + $0x3c] sm:$0xf] %v824_v46  ;;  %872 = vst [vmem:[%s1969_s25 + $0x3c] sm:$0xf] %v856_v60 }
  0x9d   : > { %921 = vst [vmem:[%s889_s29] sm:$0xff] %v920_v21  ;;  %923 = vst [vmem:[%s889_s29 + $0x10] sm:$0xff] %v922_v2 }
  0x9e PF: > { %929 = sbr.rel (!%p1463_p5) target bundleno = 170 (0xaa), region = 152  ;;  %s1287_s30 = sshll.u32 (%p1463_p5), %s1444_s18, 2  ;;  %v948_v53 = vld [vmem:[%s1960_s23] sm:$0xf] (%p1463_p5)  ;;  %v950_v0 = vld [vmem:[%s1960_s23 + $0x4] sm:$0xf] (%p1463_p5) }
  0x9f   : > { %s931_s7 = scalar_lea.vmem (%p1463_p5), %s2091_s3, %s1287_s30  ;;  %v952_v23 = vld [vmem:[%s1960_s23 + $0x8] sm:$0xf] (%p1463_p5)  ;;  %v954_v9 = vld [vmem:[%s1960_s23 + $0xc] sm:$0xf] (%p1463_p5)  ;;  %v956_v13 = vld [vmem:[%s1960_s23 + $0x10] sm:$0xf] (%p1463_p5) }
  0xa0   : > { %949 = vst [vmem:[%s931_s7] sm:$0xf] (%p1463_p5), %v948_v53  ;;  %951 = vst [vmem:[%s931_s7 + $0x8] sm:$0xf] (%p1463_p5), %v950_v0  ;;  %v958_v26 = vld [vmem:[%s1960_s23 + $0x14] sm:$0xf] (%p1463_p5) }
  0xa1   : > { %953 = vst [vmem:[%s931_s7 + $0x10] sm:$0xf] (%p1463_p5), %v952_v23  ;;  %955 = vst [vmem:[%s931_s7 + $0x18] sm:$0xf] (%p1463_p5), %v954_v9  ;;  %v960_v22 = vld [vmem:[%s1960_s23 + $0x18] sm:$0xf] (%p1463_p5) }
  0xa2   : > { %957 = vst [vmem:[%s931_s7 + $0x20] sm:$0xf] (%p1463_p5), %v956_v13  ;;  %v962_v25 = vld [vmem:[%s1960_s23 + $0x1c] sm:$0xf] (%p1463_p5)  ;;  %959 = vst [vmem:[%s931_s7 + $0x28] sm:$0xf] (%p1463_p5), %v958_v26 }
  0xa3   : > { %961 = vst [vmem:[%s931_s7 + $0x30] sm:$0xf] %v960_v22  ;;  %963 = vst [vmem:[%s931_s7 + $0x38] sm:$0xf] %v962_v25  ;;  %v964_v1 = vld [vmem:[%s1960_s23 + $0x20] sm:$0xf] }
  0xa4   : > { %v966_v52 = vld [vmem:[%s1960_s23 + $0x24] sm:$0xf]  ;;  %v968_v4 = vld [vmem:[%s1960_s23 + $0x28] sm:$0xf]  ;;  %965 = vst [vmem:[%s931_s7 + $0x40] sm:$0xf] %v964_v1 }
  0xa5   : > { %967 = vst [vmem:[%s931_s7 + $0x48] sm:$0xf] %v966_v52  ;;  %969 = vst [vmem:[%s931_s7 + $0x50] sm:$0xf] %v968_v4  ;;  %v970_v14 = vld [vmem:[%s1960_s23 + $0x2c] sm:$0xf] }
  0xa6   : > { %v972_v58 = vld [vmem:[%s1960_s23 + $0x30] sm:$0xf]  ;;  %v974_v6 = vld [vmem:[%s1960_s23 + $0x34] sm:$0xf]  ;;  %971 = vst [vmem:[%s931_s7 + $0x58] sm:$0xf] %v970_v14 }
  0xa7   : > { %973 = vst [vmem:[%s931_s7 + $0x60] sm:$0xf] %v972_v58  ;;  %975 = vst [vmem:[%s931_s7 + $0x68] sm:$0xf] %v974_v6  ;;  %v976_v5 = vld [vmem:[%s1960_s23 + $0x38] sm:$0xf] }
  0xa8   : > { %v978_v54 = vld [vmem:[%s1960_s23 + $0x3c] sm:$0xf]  ;;  %977 = vst [vmem:[%s931_s7 + $0x70] sm:$0xf] %v976_v5 }
  0xa9   : > { %979 = vst [vmem:[%s931_s7 + $0x78] sm:$0xf] %v978_v54 }
  0xaa PF: > { %1035 = sbr.rel (!%p1463_p5) target bundleno = 182 (0xb6), region = 193  ;;  %s1288_s8 = sshll.u32 (%p1463_p5), %s1444_s18, 2  ;;  %v1054_v8 = vld [vmem:[%s1969_s25] sm:$0xf] (%p1463_p5)  ;;  %v1056_v32 = vld [vmem:[%s1969_s25 + $0x4] sm:$0xf] (%p1463_p5) }
  0xab   : > { %s1037_s11 = scalar_lea.vmem (%p1463_p5), %s2092_s4, %s1288_s8  ;;  %v1058_v61 = vld [vmem:[%s1969_s25 + $0x8] sm:$0xf] (%p1463_p5)  ;;  %v1060_v11 = vld [vmem:[%s1969_s25 + $0xc] sm:$0xf] (%p1463_p5)  ;;  %v1062_v33 = vld [vmem:[%s1969_s25 + $0x10] sm:$0xf] (%p1463_p5) }
  0xac   : > { %1055 = vst [vmem:[%s1037_s11] sm:$0xf] (%p1463_p5), %v1054_v8  ;;  %1057 = vst [vmem:[%s1037_s11 + $0x8] sm:$0xf] (%p1463_p5), %v1056_v32  ;;  %v1064_v42 = vld [vmem:[%s1969_s25 + $0x14] sm:$0xf] (%p1463_p5) }
  0xad   : > { %1059 = vst [vmem:[%s1037_s11 + $0x10] sm:$0xf] (%p1463_p5), %v1058_v61  ;;  %1061 = vst [vmem:[%s1037_s11 + $0x18] sm:$0xf] (%p1463_p5), %v1060_v11  ;;  %v1066_v34 = vld [vmem:[%s1969_s25 + $0x18] sm:$0xf] (%p1463_p5) }
  0xae   : > { %1063 = vst [vmem:[%s1037_s11 + $0x20] sm:$0xf] (%p1463_p5), %v1062_v33  ;;  %v1068_v44 = vld [vmem:[%s1969_s25 + $0x1c] sm:$0xf] (%p1463_p5)  ;;  %1065 = vst [vmem:[%s1037_s11 + $0x28] sm:$0xf] (%p1463_p5), %v1064_v42 }
  0xaf   : > { %1067 = vst [vmem:[%s1037_s11 + $0x30] sm:$0xf] %v1066_v34  ;;  %1069 = vst [vmem:[%s1037_s11 + $0x38] sm:$0xf] %v1068_v44  ;;  %v1070_v43 = vld [vmem:[%s1969_s25 + $0x20] sm:$0xf] }
  0xb0   : > { %v1072_v35 = vld [vmem:[%s1969_s25 + $0x24] sm:$0xf]  ;;  %v1074_v48 = vld [vmem:[%s1969_s25 + $0x28] sm:$0xf]  ;;  %1071 = vst [vmem:[%s1037_s11 + $0x40] sm:$0xf] %v1070_v43 }
  0xb1   : > { %1073 = vst [vmem:[%s1037_s11 + $0x48] sm:$0xf] %v1072_v35  ;;  %1075 = vst [vmem:[%s1037_s11 + $0x50] sm:$0xf] %v1074_v48  ;;  %v1076_v30 = vld [vmem:[%s1969_s25 + $0x2c] sm:$0xf] }
  0xb2   : > { %v1078_v63 = vld [vmem:[%s1969_s25 + $0x30] sm:$0xf]  ;;  %v1080_v49 = vld [vmem:[%s1969_s25 + $0x34] sm:$0xf]  ;;  %1077 = vst [vmem:[%s1037_s11 + $0x58] sm:$0xf] %v1076_v30 }
  0xb3   : > { %1079 = vst [vmem:[%s1037_s11 + $0x60] sm:$0xf] %v1078_v63  ;;  %1081 = vst [vmem:[%s1037_s11 + $0x68] sm:$0xf] %v1080_v49  ;;  %v1082_v45 = vld [vmem:[%s1969_s25 + $0x38] sm:$0xf] }
  0xb4   : > { %v1084_v36 = vld [vmem:[%s1969_s25 + $0x3c] sm:$0xf]  ;;  %1083 = vst [vmem:[%s1037_s11 + $0x70] sm:$0xf] %v1082_v45 }
  0xb5   : > { %1085 = vst [vmem:[%s1037_s11 + $0x78] sm:$0xf] %v1084_v36 }
  0xb6 PF: > { %p12_p10 = scmp.ge.s32.totalorder %s1447_s19, 4   ;;  %s2131_s15 = smov %s1397_s16 }
  0xb7   : > { %s2132_s16 = smov %s1457_s22  ;;  %s2133_s17 = smov %s1447_s19 }
  0xb8   :  { %14 = sbr.rel (!%p12_p10) target bundleno = 2 (0x2), region = 297 }

</bundles_post_ra>
